<compile_context>
chip_gen: v7x
topology: tpu7x:2x2x1
jax: 0.10.0
libtpu: 0.0.40
codegen_flags: <defaults>
</compile_context>

<pallas_src>
import math
import functools

import jax
import jax.numpy as jnp
from jax.experimental import pallas as pl
from jax.experimental.pallas import tpu as pltpu


# ----------------------------- helpers ---------------------------------------

def _layer_norm(x, gamma, beta, eps=1e-5):
    # PyTorch nn.LayerNorm: biased variance, eps inside sqrt.  f32 statistics.
    mean = jnp.mean(x, axis=-1, keepdims=True)
    var = jnp.mean((x - mean) ** 2, axis=-1, keepdims=True)
    inv = jax.lax.rsqrt(var + eps)
    return (x - mean) * inv * gamma + beta


def _pick_bt(B, S, target_rows=256):
    """Sequences per grid step: aim for Bt*S ~ 128-256 rows per matmul, but try
    to keep >=2 parallel grid blocks (v7x has 2 TensorCores)."""
    divisors = [d for d in range(1, B + 1) if B % d == 0]
    fitting = [d for d in divisors if d * S <= target_rows] or [1]
    best = max(fitting)
    if B // best < 2:
        for d in sorted(divisors, reverse=True):
            if B // d >= 2 and d * S >= min(128, best * S):
                best = d
                break
    return best


# ----------------------------- Pallas kernel ----------------------------------

def encoder_stack_kernel(
    x_ref, kbias_ref,
    wqkv_ref, wo_ref, w1_ref, w2_ref,
    qkvb_ref, b1_ref, dvec_ref,
    out_ref,
    act_ref,
    *, n_head, d_k, d_v, bt, seq,
):
    layer = pl.program_id(1)
    n_layer = pl.num_programs(1)

    # First layer of each batch block: load the input into the VMEM carry.
    @pl.when(layer == 0)
    def _():
        act_ref[...] = x_ref[...].astype(jnp.float32)

    x = act_ref[...]                            # (Bt*S, D) f32 activation carry
    x_bf = x.astype(jnp.bfloat16)

    dvec = dvec_ref[0]                          # (6, D): [bo, ln1_g, ln1_b, b2, ln2_g, ln2_b]
    bo    = dvec[0:1, :]
    ln1_g = dvec[1:2, :]
    ln1_b = dvec[2:3, :]
    b2    = dvec[3:4, :]
    ln2_g = dvec[4:5, :]
    ln2_b = dvec[5:6, :]

    HK = n_head * d_k
    HV = n_head * d_v
    scale = 1.0 / math.sqrt(d_k)

    # --- Fused Q/K/V projection for all heads: one lane-dense MXU matmul -----
    qkv = jnp.dot(x_bf, wqkv_ref[0],
                  preferred_element_type=jnp.float32) + qkvb_ref[0]   # (Bt*S, 2HK+HV)

    # fold 1/sqrt(d_k) into q; cast each of q/k/v to bf16 exactly once
    q = (qkv[:, :HK] * scale).reshape(bt, seq, HK).astype(jnp.bfloat16)
    k = qkv[:, HK:2 * HK].reshape(bt, seq, HK).astype(jnp.bfloat16)
    v = qkv[:, 2 * HK:2 * HK + HV].reshape(bt, seq, HV).astype(jnp.bfloat16)

    key_bias = kbias_ref[...]                   # (Bt, 1, S) additive mask (0 / -1e9)

    # --- Per-head scores (batched over the Bt sequences); W_O stays fused ----
    ctx_heads = []
    for h in range(n_head):
        qh = q[:, :, h * d_k:(h + 1) * d_k]     # (Bt, S, d_k) bf16
        kh = k[:, :, h * d_k:(h + 1) * d_k]
        vh = v[:, :, h * d_v:(h + 1) * d_v]
        s = jnp.einsum('bqd,bkd->bqk', qh, kh,
                       preferred_element_type=jnp.float32)            # (Bt, S, S)
        s = s + key_bias
        s = s - jnp.max(s, axis=-1, keepdims=True)
        p = jnp.exp(s)
        p = p * pl.reciprocal(jnp.sum(p, axis=-1, keepdims=True), approx=True)
        ctx_heads.append(jnp.einsum('bqk,bkd->bqd', p.astype(jnp.bfloat16), vh,
                                    preferred_element_type=jnp.float32))  # (Bt, S, d_v)

    # heads concatenated on the lane axis -> single output-projection matmul
    ctx = jnp.concatenate(ctx_heads, axis=-1).reshape(bt * seq, HV)
    attn = jnp.dot(ctx.astype(jnp.bfloat16), wo_ref[0],
                   preferred_element_type=jnp.float32) + bo            # (Bt*S, D)

    # residual + LayerNorm 1
    x1 = _layer_norm(attn + x, ln1_g, ln1_b)

    # --- FFNN: fc2(relu(fc1(x1))) ---  (dropout = identity at inference)
    h1 = jnp.dot(x1.astype(jnp.bfloat16), w1_ref[0],
                 preferred_element_type=jnp.float32) + b1_ref[0]
    h1 = jnp.maximum(h1, 0.0)
    ffn = jnp.dot(h1.astype(jnp.bfloat16), w2_ref[0],
                  preferred_element_type=jnp.float32) + b2

    # residual + LayerNorm 2
    x2 = _layer_norm(ffn + x1, ln2_g, ln2_b)

    # carry to next layer; emit to HBM only once, at the last layer
    act_ref[...] = x2

    @pl.when(layer == n_layer - 1)
    def _():
        out_ref[...] = x2.astype(out_ref.dtype)


# ----------------------------- Host-side wrapper ------------------------------

def encoder_forward(x, src_pad_mask, params, *, n_head, d_k, d_v,
                    out_dtype=jnp.float32):
    """x: (B, S, D) f32.  src_pad_mask: (B, S, S) int (1 = attend, 0 = masked)."""
    B, S, D = x.shape
    L = params["wqkv"].shape[0]

    bt = _pick_bt(B, S)
    n_bblocks = B // bt

    # The Encoder's src_pad_mask is a key-padding mask (constant along the query
    # axis): compress it to a per-key additive bias row instead of DMA-ing a
    # (B,S,S) int32 tensor each grid step.
    # TODO(synk): invalid if a caller ever passes a query-varying (e.g. causal) mask.
    key_valid = src_pad_mask[:, 0, :]                                   # (B, S)
    key_bias = jnp.where(key_valid != 0, 0.0, -1e9).astype(jnp.float32)[:, None, :]  # (B,1,S)

    # Flat (B*S, D) activation layout: every projection / FFN matmul sees
    # M = Bt*S rows, and the final store is a dense contiguous slab.
    x_flat = x.reshape(B * S, D)

    kernel = functools.partial(encoder_stack_kernel, n_head=n_head, d_k=d_k,
                               d_v=d_v, bt=bt, seq=S)

    weight_names = ["wqkv", "wo", "w1", "w2", "qkv_bias", "b1", "d_vecs"]
    weights = [params[k] for k in weight_names]

    def layer_spec(arr):
        rest = arr.shape[1:]
        n = len(rest)
        return pl.BlockSpec((1,) + rest, lambda b, l, _n=n: (l,) + (0,) * _n)

    in_specs = [
        pl.BlockSpec((bt * S, D), lambda b, l: (b, 0)),    # x (consumed at layer 0 only)
        pl.BlockSpec((bt, 1, S), lambda b, l: (b, 0, 0)),  # additive key-mask bias
    ] + [layer_spec(w) for w in weights]

    out_spec = pl.BlockSpec((bt * S, D), lambda b, l: (b, 0))

    # VMEM budget: double-buffered per-layer weights + io blocks + carry + margin.
    bytes_per_layer = sum((w.size // w.shape[0]) * w.dtype.itemsize for w in weights)
    io_bytes = (bt * S * D * 4) * 2 + bt * S * 4 \
        + (bt * S * D * jnp.dtype(out_dtype).itemsize) * 2
    scratch_bytes = bt * S * D * 4
    vmem_budget = 2 * bytes_per_layer + io_bytes + scratch_bytes + (8 << 20)
    # clamp <= 48 MiB: safe on v7x (64 MiB VMEM), plenty of headroom on v5e/v6e
    vmem_limit = int(min(max(vmem_budget, 32 << 20), 48 << 20))

    out_flat = pl.pallas_call(
        kernel,
        out_shape=jax.ShapeDtypeStruct((B * S, D), out_dtype),
        grid_spec=pltpu.PrefetchScalarGridSpec(
            num_scalar_prefetch=0,
            grid=(n_bblocks, L),
            in_specs=in_specs,
            out_specs=out_spec,
            scratch_shapes=[pltpu.VMEM((bt * S, D), jnp.float32)],
        ),
        compiler_params=pltpu.CompilerParams(
            dimension_semantics=("parallel", "arbitrary"),
            vmem_limit_bytes=vmem_limit,
        ),
    )(x_flat, key_bias, *weights)

    return out_flat.reshape(B, S, D)


# ----------------------------- Parameter init ---------------------------------

def init_encoder_params(key, dim_model, d_k, d_v, n_head, dim_hidden, n_enc_layer,
                        weight_dtype=jnp.bfloat16):
    L = n_enc_layer
    HK, HV = n_head * d_k, n_head * d_v
    ks = jax.random.split(key, 8)
    std = 0.02

    wq = std * jax.random.normal(ks[0], (L, dim_model, HK), jnp.float32)
    wk = std * jax.random.normal(ks[1], (L, dim_model, HK), jnp.float32)
    wv = std * jax.random.normal(ks[2], (L, dim_model, HV), jnp.float32)
    wo = std * jax.random.normal(ks[3], (L, HV, dim_model), jnp.float32)
    w1 = std * jax.random.normal(ks[4], (L, dim_model, dim_hidden), jnp.float32)
    w2 = std * jax.random.normal(ks[5], (L, dim_hidden, dim_model), jnp.float32)
    b1 = 0.01 * jax.random.normal(ks[6], (L, 1, dim_hidden), jnp.float32)
    b2 = 0.01 * jax.random.normal(ks[7], (L, dim_model), jnp.float32)

    bq = jnp.zeros((L, HK), jnp.float32)
    bk = jnp.zeros((L, HK), jnp.float32)
    bv = jnp.zeros((L, HV), jnp.float32)
    bo = jnp.zeros((L, dim_model), jnp.float32)
    ln1_g = jnp.ones((L, dim_model), jnp.float32)
    ln1_b = jnp.zeros((L, dim_model), jnp.float32)
    ln2_g = jnp.ones((L, dim_model), jnp.float32)
    ln2_b = jnp.zeros((L, dim_model), jnp.float32)

    return {
        # fused, lane-dense bf16 projection weights
        "wqkv": jnp.concatenate([wq, wk, wv], axis=-1).astype(weight_dtype),  # (L, D, 2HK+HV)
        "wo": wo.astype(weight_dtype),                                        # (L, HV, D)
        "w1": w1.astype(weight_dtype),                                        # (L, D, dim_hidden)
        "w2": w2.astype(weight_dtype),                                        # (L, dim_hidden, D)
        # biases / LayerNorm params stay f32 (added post-accumulation)
        "qkv_bias": jnp.concatenate([bq, bk, bv], axis=-1)[:, None, :],       # (L, 1, 2HK+HV)
        "b1": b1,                                                             # (L, 1, dim_hidden)
        # packed D-sized vectors: [bo, ln1_g, ln1_b, b2, ln2_g, ln2_b] -> (L, 6, D)
        "d_vecs": jnp.stack([bo, ln1_g, ln1_b, b2, ln2_g, ln2_b], axis=1),
    }


# ----------------------------------- Main --------------------------------------

if __name__ == "__main__":
    # Small config consistent with the module's constructor.
    B, S = 2, 8
    dim_model, d_k, d_v, n_head = 32, 8, 8, 4
    dim_hidden = 64
    n_enc_layer = 2
    d_prob = 0.1  # dropout is identity at inference

    key = jax.random.PRNGKey(0)
    k_x, k_p = jax.random.split(key)

    x = jax.random.normal(k_x, (B, S, dim_model), jnp.float32)

    # pad mask (B, S, S): sequence 0 fully valid, sequence 1 has 3 padded tail
    # positions on the key axis.
    lengths = jnp.array([S, S - 3], jnp.int32)
    key_valid = (jnp.arange(S)[None, :] < lengths[:, None])            # (B, S)
    src_pad_mask = jnp.broadcast_to(key_valid[:, None, :], (B, S, S)).astype(jnp.int32)

    params = init_encoder_params(k_p, dim_model, d_k, d_v, n_head, dim_hidden, n_enc_layer)

    out = encoder_forward(x, src_pad_mask, params, n_head=n_head, d_k=d_k, d_v=d_v)
    out = jax.block_until_ready(out)

    assert out.shape == (B, S, dim_model), out.shape
    assert bool(jnp.all(jnp.isfinite(out)))
    print("KERNEL_OK")
</pallas_src>

<mosaic_0001>
module attributes {stable_mosaic.version = 11 : i64} {
  func.func @encoder_stack_kernel(%arg0: i32, %arg1: i32, %arg2: memref<16x32xf32, #tpu.memory_space<vmem>>, %arg3: memref<2x1x8xf32, #tpu.memory_space<vmem>>, %arg4: memref<1x32x96xbf16, #tpu.memory_space<vmem>>, %arg5: memref<1x32x32xbf16, #tpu.memory_space<vmem>>, %arg6: memref<1x32x64xbf16, #tpu.memory_space<vmem>>, %arg7: memref<1x64x32xbf16, #tpu.memory_space<vmem>>, %arg8: memref<1x1x96xf32, #tpu.memory_space<vmem>>, %arg9: memref<1x1x64xf32, #tpu.memory_space<vmem>>, %arg10: memref<1x6x32xf32, #tpu.memory_space<vmem>>, %arg11: memref<16x32xf32, #tpu.memory_space<vmem>>, %arg12: memref<16x32xf32, #tpu.memory_space<vmem>>) attributes {dimension_semantics = [#tpu.dimension_semantics<parallel>, #tpu.dimension_semantics<arbitrary>], iteration_bounds = array<i64: 1, 2>, scalar_prefetch = 0 : i64, scratch_operands = 1 : i64, tpu.core_type = #tpu.core_type<tc>, window_params = [{transform_indices = @transform_0, window_bounds = array<i64: 16, 32>}, {transform_indices = @transform_1, window_bounds = array<i64: 2, 1, 8>}, {transform_indices = @transform_2, window_bounds = array<i64: 1, 32, 96>}, {transform_indices = @transform_3, window_bounds = array<i64: 1, 32, 32>}, {transform_indices = @transform_4, window_bounds = array<i64: 1, 32, 64>}, {transform_indices = @transform_5, window_bounds = array<i64: 1, 64, 32>}, {transform_indices = @transform_6, window_bounds = array<i64: 1, 1, 96>}, {transform_indices = @transform_7, window_bounds = array<i64: 1, 1, 64>}, {transform_indices = @transform_8, window_bounds = array<i64: 1, 6, 32>}, {transform_indices = @transform_9, window_bounds = array<i64: 16, 32>}]} {
    %c0_i32 = arith.constant 0 : i32
    %0 = arith.cmpi eq, %arg1, %c0_i32 : i32
    %1 = arith.extui %0 : i1 to i32
    %c0_i32_0 = arith.constant 0 : i32
    %2 = arith.cmpi ne, %1, %c0_i32_0 : i32
    scf.if %2 {
      %c0_60 = arith.constant 0 : index
      %c0_61 = arith.constant 0 : index
      %178 = vector.load %arg2[%c0_60, %c0_61] : memref<16x32xf32, #tpu.memory_space<vmem>>, vector<16x32xf32>
      %c0_62 = arith.constant 0 : index
      %c0_63 = arith.constant 0 : index
      %179 = vector.load %arg12[%c0_62, %c0_63] : memref<16x32xf32, #tpu.memory_space<vmem>>, vector<16x32xf32>
      tpu.vector_store %arg12[%c0_62, %c0_63], %178 {strides = array<i32>} : memref<16x32xf32, #tpu.memory_space<vmem>>, vector<16x32xf32>,
    } else {
    }
    %c0 = arith.constant 0 : index
    %c0_1 = arith.constant 0 : index
    %3 = vector.load %arg12[%c0, %c0_1] : memref<16x32xf32, #tpu.memory_space<vmem>>, vector<16x32xf32>
    %4 = arith.truncf %3 : vector<16x32xf32> to vector<16x32xbf16>
    %c0_2 = arith.constant 0 : index
    %c0_3 = arith.constant 0 : index
    %c0_4 = arith.constant 0 : index
    %5 = vector.load %arg10[%c0_2, %c0_3, %c0_4] : memref<1x6x32xf32, #tpu.memory_space<vmem>>, vector<1x6x32xf32>
    %6 = vector.shape_cast %5 : vector<1x6x32xf32> to vector<6x32xf32>
    %7 = vector.extract_strided_slice %6 {offsets = [0, 0], sizes = [1, 32], strides = [1, 1]} : vector<6x32xf32> to vector<1x32xf32>
    %8 = vector.extract_strided_slice %6 {offsets = [1, 0], sizes = [1, 32], strides = [1, 1]} : vector<6x32xf32> to vector<1x32xf32>
    %9 = vector.extract_strided_slice %6 {offsets = [2, 0], sizes = [1, 32], strides = [1, 1]} : vector<6x32xf32> to vector<1x32xf32>
    %10 = vector.extract_strided_slice %6 {offsets = [3, 0], sizes = [1, 32], strides = [1, 1]} : vector<6x32xf32> to vector<1x32xf32>
    %11 = vector.extract_strided_slice %6 {offsets = [4, 0], sizes = [1, 32], strides = [1, 1]} : vector<6x32xf32> to vector<1x32xf32>
    %12 = vector.extract_strided_slice %6 {offsets = [5, 0], sizes = [1, 32], strides = [1, 1]} : vector<6x32xf32> to vector<1x32xf32>
    %c0_5 = arith.constant 0 : index
    %c0_6 = arith.constant 0 : index
    %c0_7 = arith.constant 0 : index
    %13 = vector.load %arg4[%c0_5, %c0_6, %c0_7] : memref<1x32x96xbf16, #tpu.memory_space<vmem>>, vector<1x32x96xbf16>
    %14 = vector.shape_cast %13 : vector<1x32x96xbf16> to vector<32x96xbf16>
    %cst = arith.constant dense<0.000000e+00> : vector<16x96xf32>
    %15 = tpu.matmul %4, %14, %cst {dimension_numbers = #tpu.dot_dimension_numbers<[1], [0], [0], [1], [0, 0, 1, 1], [], []>} : vector<16x32xbf16>, vector<32x96xbf16>, vector<16x96xf32> -> vector<16x96xf32>
    %c0_8 = arith.constant 0 : index
    %c0_9 = arith.constant 0 : index
    %c0_10 = arith.constant 0 : index
    %16 = vector.load %arg8[%c0_8, %c0_9, %c0_10] : memref<1x1x96xf32, #tpu.memory_space<vmem>>, vector<1x1x96xf32>
    %17 = vector.shape_cast %16 : vector<1x1x96xf32> to vector<1x96xf32>
    %18 = vector.broadcast %17 : vector<1x96xf32> to vector<16x96xf32>
    %19 = arith.addf %15, %18 : vector<16x96xf32>
    %20 = vector.extract_strided_slice %19 {offsets = [0, 0], sizes = [16, 32], strides = [1, 1]} : vector<16x96xf32> to vector<16x32xf32>
    %cst_11 = arith.constant 0.353553385 : f32
    %21 = vector.broadcast %cst_11 : f32 to vector<16x32xf32>
    %22 = arith.mulf %20, %21 : vector<16x32xf32>
    %23 = vector.shape_cast %22 : vector<16x32xf32> to vector<2x8x32xf32>
    %24 = arith.truncf %23 : vector<2x8x32xf32> to vector<2x8x32xbf16>
    %25 = vector.extract_strided_slice %19 {offsets = [0, 32], sizes = [16, 32], strides = [1, 1]} : vector<16x96xf32> to vector<16x32xf32>
    %26 = vector.shape_cast %25 : vector<16x32xf32> to vector<2x8x32xf32>
    %27 = arith.truncf %26 : vector<2x8x32xf32> to vector<2x8x32xbf16>
    %28 = vector.extract_strided_slice %19 {offsets = [0, 64], sizes = [16, 32], strides = [1, 1]} : vector<16x96xf32> to vector<16x32xf32>
    %29 = vector.shape_cast %28 : vector<16x32xf32> to vector<2x8x32xf32>
    %30 = arith.truncf %29 : vector<2x8x32xf32> to vector<2x8x32xbf16>
    %c0_12 = arith.constant 0 : index
    %c0_13 = arith.constant 0 : index
    %c0_14 = arith.constant 0 : index
    %31 = vector.load %arg3[%c0_12, %c0_13, %c0_14] : memref<2x1x8xf32, #tpu.memory_space<vmem>>, vector<2x1x8xf32>
    %32 = vector.extract_strided_slice %24 {offsets = [0, 0, 0], sizes = [2, 8, 8], strides = [1, 1, 1]} : vector<2x8x32xbf16> to vector<2x8x8xbf16>
    %33 = vector.extract_strided_slice %27 {offsets = [0, 0, 0], sizes = [2, 8, 8], strides = [1, 1, 1]} : vector<2x8x32xbf16> to vector<2x8x8xbf16>
    %34 = vector.extract_strided_slice %30 {offsets = [0, 0, 0], sizes = [2, 8, 8], strides = [1, 1, 1]} : vector<2x8x32xbf16> to vector<2x8x8xbf16>
    "tpu.trace_start"() <{level = 10 : i32, message = "bqd,bkd->bqk"}> : () -> ()
    %cst_15 = arith.constant dense<0.000000e+00> : vector<2x8x8xf32>
    %35 = tpu.matmul %32, %33, %cst_15 {dimension_numbers = #tpu.dot_dimension_numbers<[2], [2], [1], [1], [0, 0, 0, 1, 1, 1], [0], [0]>} : vector<2x8x8xbf16>, vector<2x8x8xbf16>, vector<2x8x8xf32> -> vector<2x8x8xf32>
    "tpu.trace_stop"() : () -> ()
    %36 = vector.broadcast %31 : vector<2x1x8xf32> to vector<2x8x8xf32>
    %37 = arith.addf %35, %36 : vector<2x8x8xf32>
    %cst_16 = arith.constant dense<0xFF800000> : vector<2x8xf32>
    %38 = vector.multi_reduction <maximumf>, %37, %cst_16 [2] : vector<2x8x8xf32> to vector<2x8xf32>
    %39 = vector.shape_cast %38 : vector<2x8xf32> to vector<2x8x1xf32>
    %40 = vector.broadcast %39 : vector<2x8x1xf32> to vector<2x8x8xf32>
    %41 = arith.subf %37, %40 : vector<2x8x8xf32>
    %42 = math.exp %41 : vector<2x8x8xf32>
    %cst_17 = arith.constant dense<0.000000e+00> : vector<2x8xf32>
    %43 = vector.multi_reduction <add>, %42, %cst_17 [2] : vector<2x8x8xf32> to vector<2x8xf32>
    %44 = vector.shape_cast %43 : vector<2x8xf32> to vector<2x8x1xf32>
    %45 = tpu.reciprocal %44 {approx = true} : vector<2x8x1xf32> -> vector<2x8x1xf32>
    %46 = vector.broadcast %45 : vector<2x8x1xf32> to vector<2x8x8xf32>
    %47 = arith.mulf %42, %46 : vector<2x8x8xf32>
    %48 = arith.truncf %47 : vector<2x8x8xf32> to vector<2x8x8xbf16>
    "tpu.trace_start"() <{level = 10 : i32, message = "bqk,bkd->bqd"}> : () -> ()
    %cst_18 = arith.constant dense<0.000000e+00> : vector<2x8x8xf32>
    %49 = tpu.matmul %48, %34, %cst_18 {dimension_numbers = #tpu.dot_dimension_numbers<[2], [1], [1], [2], [0, 0, 0, 1, 1, 2], [0], [0]>} : vector<2x8x8xbf16>, vector<2x8x8xbf16>, vector<2x8x8xf32> -> vector<2x8x8xf32>
    "tpu.trace_stop"() : () -> ()
    %50 = vector.extract_strided_slice %24 {offsets = [0, 0, 8], sizes = [2, 8, 8], strides = [1, 1, 1]} : vector<2x8x32xbf16> to vector<2x8x8xbf16>
    %51 = vector.extract_strided_slice %27 {offsets = [0, 0, 8], sizes = [2, 8, 8], strides = [1, 1, 1]} : vector<2x8x32xbf16> to vector<2x8x8xbf16>
    %52 = vector.extract_strided_slice %30 {offsets = [0, 0, 8], sizes = [2, 8, 8], strides = [1, 1, 1]} : vector<2x8x32xbf16> to vector<2x8x8xbf16>
    "tpu.trace_start"() <{level = 10 : i32, message = "bqd,bkd->bqk"}> : () -> ()
    %cst_19 = arith.constant dense<0.000000e+00> : vector<2x8x8xf32>
    %53 = tpu.matmul %50, %51, %cst_19 {dimension_numbers = #tpu.dot_dimension_numbers<[2], [2], [1], [1], [0, 0, 0, 1, 1, 1], [0], [0]>} : vector<2x8x8xbf16>, vector<2x8x8xbf16>, vector<2x8x8xf32> -> vector<2x8x8xf32>
    "tpu.trace_stop"() : () -> ()
    %54 = vector.broadcast %31 : vector<2x1x8xf32> to vector<2x8x8xf32>
    %55 = arith.addf %53, %54 : vector<2x8x8xf32>
    %cst_20 = arith.constant dense<0xFF800000> : vector<2x8xf32>
    %56 = vector.multi_reduction <maximumf>, %55, %cst_20 [2] : vector<2x8x8xf32> to vector<2x8xf32>
    %57 = vector.shape_cast %56 : vector<2x8xf32> to vector<2x8x1xf32>
    %58 = vector.broadcast %57 : vector<2x8x1xf32> to vector<2x8x8xf32>
    %59 = arith.subf %55, %58 : vector<2x8x8xf32>
    %60 = math.exp %59 : vector<2x8x8xf32>
    %cst_21 = arith.constant dense<0.000000e+00> : vector<2x8xf32>
    %61 = vector.multi_reduction <add>, %60, %cst_21 [2] : vector<2x8x8xf32> to vector<2x8xf32>
    %62 = vector.shape_cast %61 : vector<2x8xf32> to vector<2x8x1xf32>
    %63 = tpu.reciprocal %62 {approx = true} : vector<2x8x1xf32> -> vector<2x8x1xf32>
    %64 = vector.broadcast %63 : vector<2x8x1xf32> to vector<2x8x8xf32>
    %65 = arith.mulf %60, %64 : vector<2x8x8xf32>
    %66 = arith.truncf %65 : vector<2x8x8xf32> to vector<2x8x8xbf16>
    "tpu.trace_start"() <{level = 10 : i32, message = "bqk,bkd->bqd"}> : () -> ()
    %cst_22 = arith.constant dense<0.000000e+00> : vector<2x8x8xf32>
    %67 = tpu.matmul %66, %52, %cst_22 {dimension_numbers = #tpu.dot_dimension_numbers<[2], [1], [1], [2], [0, 0, 0, 1, 1, 2], [0], [0]>} : vector<2x8x8xbf16>, vector<2x8x8xbf16>, vector<2x8x8xf32> -> vector<2x8x8xf32>
    "tpu.trace_stop"() : () -> ()
    %68 = vector.extract_strided_slice %24 {offsets = [0, 0, 16], sizes = [2, 8, 8], strides = [1, 1, 1]} : vector<2x8x32xbf16> to vector<2x8x8xbf16>
    %69 = vector.extract_strided_slice %27 {offsets = [0, 0, 16], sizes = [2, 8, 8], strides = [1, 1, 1]} : vector<2x8x32xbf16> to vector<2x8x8xbf16>
    %70 = vector.extract_strided_slice %30 {offsets = [0, 0, 16], sizes = [2, 8, 8], strides = [1, 1, 1]} : vector<2x8x32xbf16> to vector<2x8x8xbf16>
    "tpu.trace_start"() <{level = 10 : i32, message = "bqd,bkd->bqk"}> : () -> ()
    %cst_23 = arith.constant dense<0.000000e+00> : vector<2x8x8xf32>
    %71 = tpu.matmul %68, %69, %cst_23 {dimension_numbers = #tpu.dot_dimension_numbers<[2], [2], [1], [1], [0, 0, 0, 1, 1, 1], [0], [0]>} : vector<2x8x8xbf16>, vector<2x8x8xbf16>, vector<2x8x8xf32> -> vector<2x8x8xf32>
    "tpu.trace_stop"() : () -> ()
    %72 = vector.broadcast %31 : vector<2x1x8xf32> to vector<2x8x8xf32>
    %73 = arith.addf %71, %72 : vector<2x8x8xf32>
    %cst_24 = arith.constant dense<0xFF800000> : vector<2x8xf32>
    %74 = vector.multi_reduction <maximumf>, %73, %cst_24 [2] : vector<2x8x8xf32> to vector<2x8xf32>
    %75 = vector.shape_cast %74 : vector<2x8xf32> to vector<2x8x1xf32>
    %76 = vector.broadcast %75 : vector<2x8x1xf32> to vector<2x8x8xf32>
    %77 = arith.subf %73, %76 : vector<2x8x8xf32>
    %78 = math.exp %77 : vector<2x8x8xf32>
    %cst_25 = arith.constant dense<0.000000e+00> : vector<2x8xf32>
    %79 = vector.multi_reduction <add>, %78, %cst_25 [2] : vector<2x8x8xf32> to vector<2x8xf32>
    %80 = vector.shape_cast %79 : vector<2x8xf32> to vector<2x8x1xf32>
    %81 = tpu.reciprocal %80 {approx = true} : vector<2x8x1xf32> -> vector<2x8x1xf32>
    %82 = vector.broadcast %81 : vector<2x8x1xf32> to vector<2x8x8xf32>
    %83 = arith.mulf %78, %82 : vector<2x8x8xf32>
    %84 = arith.truncf %83 : vector<2x8x8xf32> to vector<2x8x8xbf16>
    "tpu.trace_start"() <{level = 10 : i32, message = "bqk,bkd->bqd"}> : () -> ()
    %cst_26 = arith.constant dense<0.000000e+00> : vector<2x8x8xf32>
    %85 = tpu.matmul %84, %70, %cst_26 {dimension_numbers = #tpu.dot_dimension_numbers<[2], [1], [1], [2], [0, 0, 0, 1, 1, 2], [0], [0]>} : vector<2x8x8xbf16>, vector<2x8x8xbf16>, vector<2x8x8xf32> -> vector<2x8x8xf32>
    "tpu.trace_stop"() : () -> ()
    %86 = vector.extract_strided_slice %24 {offsets = [0, 0, 24], sizes = [2, 8, 8], strides = [1, 1, 1]} : vector<2x8x32xbf16> to vector<2x8x8xbf16>
    %87 = vector.extract_strided_slice %27 {offsets = [0, 0, 24], sizes = [2, 8, 8], strides = [1, 1, 1]} : vector<2x8x32xbf16> to vector<2x8x8xbf16>
    %88 = vector.extract_strided_slice %30 {offsets = [0, 0, 24], sizes = [2, 8, 8], strides = [1, 1, 1]} : vector<2x8x32xbf16> to vector<2x8x8xbf16>
    "tpu.trace_start"() <{level = 10 : i32, message = "bqd,bkd->bqk"}> : () -> ()
    %cst_27 = arith.constant dense<0.000000e+00> : vector<2x8x8xf32>
    %89 = tpu.matmul %86, %87, %cst_27 {dimension_numbers = #tpu.dot_dimension_numbers<[2], [2], [1], [1], [0, 0, 0, 1, 1, 1], [0], [0]>} : vector<2x8x8xbf16>, vector<2x8x8xbf16>, vector<2x8x8xf32> -> vector<2x8x8xf32>
    "tpu.trace_stop"() : () -> ()
    %90 = vector.broadcast %31 : vector<2x1x8xf32> to vector<2x8x8xf32>
    %91 = arith.addf %89, %90 : vector<2x8x8xf32>
    %cst_28 = arith.constant dense<0xFF800000> : vector<2x8xf32>
    %92 = vector.multi_reduction <maximumf>, %91, %cst_28 [2] : vector<2x8x8xf32> to vector<2x8xf32>
    %93 = vector.shape_cast %92 : vector<2x8xf32> to vector<2x8x1xf32>
    %94 = vector.broadcast %93 : vector<2x8x1xf32> to vector<2x8x8xf32>
    %95 = arith.subf %91, %94 : vector<2x8x8xf32>
    %96 = math.exp %95 : vector<2x8x8xf32>
    %cst_29 = arith.constant dense<0.000000e+00> : vector<2x8xf32>
    %97 = vector.multi_reduction <add>, %96, %cst_29 [2] : vector<2x8x8xf32> to vector<2x8xf32>
    %98 = vector.shape_cast %97 : vector<2x8xf32> to vector<2x8x1xf32>
    %99 = tpu.reciprocal %98 {approx = true} : vector<2x8x1xf32> -> vector<2x8x1xf32>
    %100 = vector.broadcast %99 : vector<2x8x1xf32> to vector<2x8x8xf32>
    %101 = arith.mulf %96, %100 : vector<2x8x8xf32>
    %102 = arith.truncf %101 : vector<2x8x8xf32> to vector<2x8x8xbf16>
    "tpu.trace_start"() <{level = 10 : i32, message = "bqk,bkd->bqd"}> : () -> ()
    %cst_30 = arith.constant dense<0.000000e+00> : vector<2x8x8xf32>
    %103 = tpu.matmul %102, %88, %cst_30 {dimension_numbers = #tpu.dot_dimension_numbers<[2], [1], [1], [2], [0, 0, 0, 1, 1, 2], [0], [0]>} : vector<2x8x8xbf16>, vector<2x8x8xbf16>, vector<2x8x8xf32> -> vector<2x8x8xf32>
    "tpu.trace_stop"() : () -> ()
    %104 = tpu.concatenate %49, %67, %85, %103 in 2 : vector<2x8x8xf32>, vector<2x8x8xf32>, vector<2x8x8xf32>, vector<2x8x8xf32> -> vector<2x8x32xf32>
    %105 = vector.shape_cast %104 : vector<2x8x32xf32> to vector<16x32xf32>
    %106 = arith.truncf %105 : vector<16x32xf32> to vector<16x32xbf16>
    %c0_31 = arith.constant 0 : index
    %c0_32 = arith.constant 0 : index
    %c0_33 = arith.constant 0 : index
    %107 = vector.load %arg5[%c0_31, %c0_32, %c0_33] : memref<1x32x32xbf16, #tpu.memory_space<vmem>>, vector<1x32x32xbf16>
    %108 = vector.shape_cast %107 : vector<1x32x32xbf16> to vector<32x32xbf16>
    %cst_34 = arith.constant dense<0.000000e+00> : vector<16x32xf32>
    %109 = tpu.matmul %106, %108, %cst_34 {dimension_numbers = #tpu.dot_dimension_numbers<[1], [0], [0], [1], [0, 0, 1, 1], [], []>} : vector<16x32xbf16>, vector<32x32xbf16>, vector<16x32xf32> -> vector<16x32xf32>
    %110 = vector.broadcast %7 : vector<1x32xf32> to vector<16x32xf32>
    %111 = arith.addf %109, %110 : vector<16x32xf32>
    %112 = arith.addf %111, %3 : vector<16x32xf32>
    %cst_35 = arith.constant dense<0.000000e+00> : vector<16xf32>
    %113 = vector.multi_reduction <add>, %112, %cst_35 [1] : vector<16x32xf32> to vector<16xf32>
    %114 = vector.shape_cast %113 : vector<16xf32> to vector<16x1xf32>
    %cst_36 = arith.constant 3.200000e+01 : f32
    %115 = vector.broadcast %cst_36 : f32 to vector<16x1xf32>
    %116 = arith.divf %114, %115 : vector<16x1xf32>
    %117 = vector.broadcast %116 : vector<16x1xf32> to vector<16x32xf32>
    %118 = arith.subf %112, %117 : vector<16x32xf32>
    %119 = arith.mulf %118, %118 : vector<16x32xf32>
    %cst_37 = arith.constant dense<0.000000e+00> : vector<16xf32>
    %120 = vector.multi_reduction <add>, %119, %cst_37 [1] : vector<16x32xf32> to vector<16xf32>
    %121 = vector.shape_cast %120 : vector<16xf32> to vector<16x1xf32>
    %cst_38 = arith.constant 3.200000e+01 : f32
    %122 = vector.broadcast %cst_38 : f32 to vector<16x1xf32>
    %123 = arith.divf %121, %122 : vector<16x1xf32>
    %cst_39 = arith.constant 9.99999974E-6 : f32
    %124 = vector.broadcast %cst_39 : f32 to vector<16x1xf32>
    %125 = arith.addf %123, %124 : vector<16x1xf32>
    %126 = math.rsqrt %125 : vector<16x1xf32>
    %127 = vector.broadcast %116 : vector<16x1xf32> to vector<16x32xf32>
    %128 = arith.subf %112, %127 : vector<16x32xf32>
    %129 = vector.broadcast %126 : vector<16x1xf32> to vector<16x32xf32>
    %130 = arith.mulf %128, %129 : vector<16x32xf32>
    %131 = vector.broadcast %8 : vector<1x32xf32> to vector<16x32xf32>
    %132 = arith.mulf %130, %131 : vector<16x32xf32>
    %133 = vector.broadcast %9 : vector<1x32xf32> to vector<16x32xf32>
    %134 = arith.addf %132, %133 : vector<16x32xf32>
    %135 = arith.truncf %134 : vector<16x32xf32> to vector<16x32xbf16>
    %c0_40 = arith.constant 0 : index
    %c0_41 = arith.constant 0 : index
    %c0_42 = arith.constant 0 : index
    %136 = vector.load %arg6[%c0_40, %c0_41, %c0_42] : memref<1x32x64xbf16, #tpu.memory_space<vmem>>, vector<1x32x64xbf16>
    %137 = vector.shape_cast %136 : vector<1x32x64xbf16> to vector<32x64xbf16>
    %cst_43 = arith.constant dense<0.000000e+00> : vector<16x64xf32>
    %138 = tpu.matmul %135, %137, %cst_43 {dimension_numbers = #tpu.dot_dimension_numbers<[1], [0], [0], [1], [0, 0, 1, 1], [], []>} : vector<16x32xbf16>, vector<32x64xbf16>, vector<16x64xf32> -> vector<16x64xf32>
    %c0_44 = arith.constant 0 : index
    %c0_45 = arith.constant 0 : index
    %c0_46 = arith.constant 0 : index
    %139 = vector.load %arg9[%c0_44, %c0_45, %c0_46] : memref<1x1x64xf32, #tpu.memory_space<vmem>>, vector<1x1x64xf32>
    %140 = vector.shape_cast %139 : vector<1x1x64xf32> to vector<1x64xf32>
    %141 = vector.broadcast %140 : vector<1x64xf32> to vector<16x64xf32>
    %142 = arith.addf %138, %141 : vector<16x64xf32>
    %cst_47 = arith.constant 0.000000e+00 : f32
    %143 = vector.broadcast %cst_47 : f32 to vector<16x64xf32>
    %144 = arith.maximumf %142, %143 : vector<16x64xf32>
    %145 = arith.truncf %144 : vector<16x64xf32> to vector<16x64xbf16>
    %c0_48 = arith.constant 0 : index
    %c0_49 = arith.constant 0 : index
    %c0_50 = arith.constant 0 : index
    %146 = vector.load %arg7[%c0_48, %c0_49, %c0_50] : memref<1x64x32xbf16, #tpu.memory_space<vmem>>, vector<1x64x32xbf16>
    %147 = vector.shape_cast %146 : vector<1x64x32xbf16> to vector<64x32xbf16>
    %cst_51 = arith.constant dense<0.000000e+00> : vector<16x32xf32>
    %148 = tpu.matmul %145, %147, %cst_51 {dimension_numbers = #tpu.dot_dimension_numbers<[1], [0], [0], [1], [0, 0, 1, 1], [], []>} : vector<16x64xbf16>, vector<64x32xbf16>, vector<16x32xf32> -> vector<16x32xf32>
    %149 = vector.broadcast %10 : vector<1x32xf32> to vector<16x32xf32>
    %150 = arith.addf %148, %149 : vector<16x32xf32>
    %151 = arith.addf %150, %134 : vector<16x32xf32>
    %cst_52 = arith.constant dense<0.000000e+00> : vector<16xf32>
    %152 = vector.multi_reduction <add>, %151, %cst_52 [1] : vector<16x32xf32> to vector<16xf32>
    %153 = vector.shape_cast %152 : vector<16xf32> to vector<16x1xf32>
    %cst_53 = arith.constant 3.200000e+01 : f32
    %154 = vector.broadcast %cst_53 : f32 to vector<16x1xf32>
    %155 = arith.divf %153, %154 : vector<16x1xf32>
    %156 = vector.broadcast %155 : vector<16x1xf32> to vector<16x32xf32>
    %157 = arith.subf %151, %156 : vector<16x32xf32>
    %158 = arith.mulf %157, %157 : vector<16x32xf32>
    %cst_54 = arith.constant dense<0.000000e+00> : vector<16xf32>
    %159 = vector.multi_reduction <add>, %158, %cst_54 [1] : vector<16x32xf32> to vector<16xf32>
    %160 = vector.shape_cast %159 : vector<16xf32> to vector<16x1xf32>
    %cst_55 = arith.constant 3.200000e+01 : f32
    %161 = vector.broadcast %cst_55 : f32 to vector<16x1xf32>
    %162 = arith.divf %160, %161 : vector<16x1xf32>
    %cst_56 = arith.constant 9.99999974E-6 : f32
    %163 = vector.broadcast %cst_56 : f32 to vector<16x1xf32>
    %164 = arith.addf %162, %163 : vector<16x1xf32>
    %165 = math.rsqrt %164 : vector<16x1xf32>
    %166 = vector.broadcast %155 : vector<16x1xf32> to vector<16x32xf32>
    %167 = arith.subf %151, %166 : vector<16x32xf32>
    %168 = vector.broadcast %165 : vector<16x1xf32> to vector<16x32xf32>
    %169 = arith.mulf %167, %168 : vector<16x32xf32>
    %170 = vector.broadcast %11 : vector<1x32xf32> to vector<16x32xf32>
    %171 = arith.mulf %169, %170 : vector<16x32xf32>
    %172 = vector.broadcast %12 : vector<1x32xf32> to vector<16x32xf32>
    %173 = arith.addf %171, %172 : vector<16x32xf32>
    %c0_57 = arith.constant 0 : index
    %c0_58 = arith.constant 0 : index
    %174 = vector.load %arg12[%c0_57, %c0_58] : memref<16x32xf32, #tpu.memory_space<vmem>>, vector<16x32xf32>
    tpu.vector_store %arg12[%c0_57, %c0_58], %173 {strides = array<i32>} : memref<16x32xf32, #tpu.memory_space<vmem>>, vector<16x32xf32>,
    %c1_i32 = arith.constant 1 : i32
    %175 = arith.cmpi eq, %arg1, %c1_i32 : i32
    %176 = arith.extui %175 : i1 to i32
    %c0_i32_59 = arith.constant 0 : i32
    %177 = arith.cmpi ne, %176, %c0_i32_59 : i32
    scf.if %177 {
      %c0_60 = arith.constant 0 : index
      %c0_61 = arith.constant 0 : index
      %178 = vector.load %arg11[%c0_60, %c0_61] : memref<16x32xf32, #tpu.memory_space<vmem>>, vector<16x32xf32>
      tpu.vector_store %arg11[%c0_60, %c0_61], %173 {strides = array<i32>} : memref<16x32xf32, #tpu.memory_space<vmem>>, vector<16x32xf32>,
    } else {
    }
    return
  }
  func.func @transform_0(%arg0: i32, %arg1: i32) -> (i32, i32) {
    %c0_i32 = arith.constant 0 : i32
    %c0_i32_0 = arith.constant 0 : i32
    return %arg0, %c0_i32 : i32, i32
  }
  func.func @transform_1(%arg0: i32, %arg1: i32) -> (i32, i32, i32) {
    %c0_i32 = arith.constant 0 : i32
    %c0_i32_0 = arith.constant 0 : i32
    %c0_i32_1 = arith.constant 0 : i32
    return %arg0, %c0_i32, %c0_i32_0 : i32, i32, i32
  }
  func.func @transform_2(%arg0: i32, %arg1: i32) -> (i32, i32, i32) {
    %c0_i32 = arith.constant 0 : i32
    %c0_i32_0 = arith.constant 0 : i32
    %c0_i32_1 = arith.constant 0 : i32
    return %arg1, %c0_i32, %c0_i32_0 : i32, i32, i32
  }
  func.func @transform_3(%arg0: i32, %arg1: i32) -> (i32, i32, i32) {
    %c0_i32 = arith.constant 0 : i32
    %c0_i32_0 = arith.constant 0 : i32
    %c0_i32_1 = arith.constant 0 : i32
    return %arg1, %c0_i32, %c0_i32_0 : i32, i32, i32
  }
  func.func @transform_4(%arg0: i32, %arg1: i32) -> (i32, i32, i32) {
    %c0_i32 = arith.constant 0 : i32
    %c0_i32_0 = arith.constant 0 : i32
    %c0_i32_1 = arith.constant 0 : i32
    return %arg1, %c0_i32, %c0_i32_0 : i32, i32, i32
  }
  func.func @transform_5(%arg0: i32, %arg1: i32) -> (i32, i32, i32) {
    %c0_i32 = arith.constant 0 : i32
    %c0_i32_0 = arith.constant 0 : i32
    %c0_i32_1 = arith.constant 0 : i32
    return %arg1, %c0_i32, %c0_i32_0 : i32, i32, i32
  }
  func.func @transform_6(%arg0: i32, %arg1: i32) -> (i32, i32, i32) {
    %c0_i32 = arith.constant 0 : i32
    %c0_i32_0 = arith.constant 0 : i32
    %c0_i32_1 = arith.constant 0 : i32
    return %arg1, %c0_i32, %c0_i32_0 : i32, i32, i32
  }
  func.func @transform_7(%arg0: i32, %arg1: i32) -> (i32, i32, i32) {
    %c0_i32 = arith.constant 0 : i32
    %c0_i32_0 = arith.constant 0 : i32
    %c0_i32_1 = arith.constant 0 : i32
    return %arg1, %c0_i32, %c0_i32_0 : i32, i32, i32
  }
  func.func @transform_8(%arg0: i32, %arg1: i32) -> (i32, i32, i32) {
    %c0_i32 = arith.constant 0 : i32
    %c0_i32_0 = arith.constant 0 : i32
    %c0_i32_1 = arith.constant 0 : i32
    return %arg1, %c0_i32, %c0_i32_0 : i32, i32, i32
  }
  func.func @transform_9(%arg0: i32, %arg1: i32) -> (i32, i32) {
    %c0_i32 = arith.constant 0 : i32
    %c0_i32_0 = arith.constant 0 : i32
    return %arg0, %c0_i32 : i32, i32
  }
}

</mosaic_0001>

<bundles_post_ra>
// kernel: tpu_custom_call.1
= control target key start
LH: loop header
LB: loop body
LE: loop exit
PB: predicated region body
PF: predicated region fallthrough
CT: control target
= control target key end

     0   :  { %s2856_s0 = inlined_call_operand.hbm [shape: f32[16,32], index: 0, kind: input, shape index: {}]   ;;  %s2857_s1 = inlined_call_operand.vmem [shape: f32[2,1,8], index: 1, kind: input, shape index: {}]   ;;  %s2858_s2 = inlined_call_operand.vmem [shape: bf16[2,32,96], index: 2, kind: input, shape index: {}]   ;;  %s2859_s3 = inlined_call_operand.vmem [shape: bf16[2,32,32], index: 3, kind: input, shape index: {}]   ;;  %s2860_s4 = inlined_call_operand.vmem [shape: bf16[2,32,64], index: 4, kind: input, shape index: {}]   ;;  %s2861_s5 = inlined_call_operand.vmem [shape: bf16[2,64,32], index: 5, kind: input, shape index: {}]   ;;  %s2862_s6 = inlined_call_operand.vmem [shape: f32[2,1,96], index: 6, kind: input, shape index: {}]   ;;  %s2863_s7 = inlined_call_operand.vmem [shape: f32[2,1,64], index: 7, kind: input, shape index: {}]   ;;  %s2864_s8 = inlined_call_operand.vmem [shape: f32[2,6,32], index: 8, kind: input, shape index: {}]   ;;  %s2865_s9 = inlined_call_operand.hbm [shape: f32[16,32], index: 9, kind: output, shape index: {}]  }
   0x1   :  { %2870 = sst [smem:[#allocation9_spill]] %s2856_s0 }
   0x2   :  { %2871 = sst [smem:[#allocation10_spill]] %s2858_s2 }
   0x3   :  { %2872 = sst [smem:[#allocation11_spill]] %s2859_s3 }
   0x4   :  { %14 = vsyncpa [#allocation4], 0 }
   0x5   :  { %15 = vsyncpa [#allocation5], 0  ;;  %s2482_s30 = smov 0   ;;  %s2484_s10 = smov 0  }
   0x6   :  { %s2486_s11 = smov 0  }
   0x7 LB: > { %s2869_s12 = sadd.s32 4294967295, %s2409_s11   ;;  %s30_s13 = sadd.s32 1, %s2405_s10  ;;  %s2409_s11 = sphi %s2486_s11, %s21_s11   ;;  %s2405_s10 = sphi %s2484_s10, %s2884_s10   ;;  %s2401_s30 = sphi %s2482_s30, %s2883_s30  }
   0x8   : > { %p31_p0 = scmp.ge.s32.totalorder %s30_s13, 2  ;;  %p1962_p1 = scmp.ge.s32.totalorder %s2409_s11, 1 }
   0x9   : > { %p298_p2 = scmp.lt.s32.totalorder %s2409_s11, 3  ;;  %p2509_p4 = scmp.eq.s32.totalorder %s2869_s12, 0 }
   0xa   : > { %s2886_s13 = smov (%p31_p0, %s30_s13), 0  ;;  %s2411_s16 = smov [#allocation3]  }
   0xb   : > { %p2503_p3 = pnand %p1962_p1, %p298_p2  ;;  %s313_s17 = sshll.u32 %s2411_s16, 4  ;;  %s314_s17 = int_to_ptr.vmem [resolvable:$true] %s313_s17 }
   0xc   : > { %s2874_s15 = scalar_select %p2509_p4, 1, 0 }
   0xd   : > { %s2873_s14 = scalar_select %p2503_p3, 1, 0 }
   0xe   : > { %p2207_p5 = pneg %p2503_p3  ;;  %s2876_s0 = sld [smem:[#allocation9_spill]] }
  0x10   : > { %p2517_p6 = pnand %p2509_p4, %p2207_p5 }
  0x12   : > { %p2327_p8 = pneg %p2517_p6 }
  0x14   : > { %s2325_s21 = scalar_lea.hbm %s2876_s0, 256 }
  0x15   : > { %p2326_p7 = scmp.ne.s32.totalorder %s2876_s0, %s2325_s21  ;;  %p2332_p11 = scmp.lt.u32.totalorder %s2325_s21, %s2876_s0 }
  0x17   : > { %p2328_p9 = pnand %p2327_p8, %p2326_p7 }
  0x19   : > { %p2329_p10 = pneg %p2328_p9 }
  0x1b   : > { %p2334_p12 = pnand %p2332_p11, %p2329_p10 }
  0x1d   : > { %2337 = shalt.err (!%p2334_p12)
}
  0x1e   : > { %s2338_s26 = scalar_lea.vmem %s314_s17, 256  ;;  %p2346_p2 = scmp.lt.s32.totalorder %s314_s17, %s314_s17 }
  0x1f   : > { %p2339_p13 = scmp.ne.s32.totalorder %s314_s17, %s2338_s26  ;;  %p2347_p5 = scmp.lt.s32.totalorder %s2338_s26, %s2338_s26 }
  0x21   : > { %p2341_p0 = pnand %p2339_p13, %p2327_p8  ;;  %p2348_p4 = por %p2347_p5, %p2346_p2 }
  0x23   : > { %p2342_p1 = pneg %p2341_p0 }
  0x25   : > { %p2349_p3 = pnand %p2348_p4, %p2342_p1 }
  0x27   : > { %2352 = shalt.err (!%p2349_p3)
}
  0x28   : > { %s2412_s27 = smov 128   ;;  %s2413_s28 = smov 8  }
  0x29   : > { %2210 = dma.hbm_to_vmem [thread:$0]  (!%p2517_p6), %s2876_s0, 256, %s314_s17, [#allocation4], %s2412_s27, %s2412_s27, %s2413_s28  }
  0x2a   : > { %p2877_p7 = scmp.ne.s32.totalorder %s2873_s14, 0 }
  0x2b   : > { %p2878_p9 = scmp.ne.s32.totalorder (!%p2877_p7), %s2874_s15, 0 }
  0x2c   : > { %388 = sbr.rel (%p2877_p7) target bundleno = 4203 (0x106b), region = 56 }
  0x33   : > { %2392 = dma.done.wait (%p2878_p9), [#allocation4], 256  }
  0x34   : > { %2394 = vsyncadd (%p2878_p9), [#allocation4], 4294967040  ;;  %p454_p3 = scmp.lt.s32.totalorder %s2401_s30, 1  ;;  %s2879_s2 = sld [smem:[#allocation10_spill]] }
  0x35   : > { %s2880_s3 = sld [smem:[#allocation11_spill]]  ;;  %p1977_p4 = scmp.ne.s32.totalorder %s2401_s30, 0 }
  0x36   : > { %s2545_s19 = scalar_select %p454_p3, %s2401_s30, 1 }
  0x37   : > { %489 = sbr.rel (%p1977_p4) target bundleno = 62 (0x3e), region = 64  ;;  %v490_v0 = vld [vmem:[#allocation3] sm:$0xff] (!%p1977_p4)  ;;  %vm492_vm0 = vcmask (!%p1977_p4), 261120   ;;  %v491_v1 = vld [vmem:[#allocation3 + $0x8] sm:$0xff] (!%p1977_p4) }
  0x38   : > { %s2017_s17 = sshll.u32 %s2545_s19, 4  ;;  %s2020_s18 = sshll.u32 %s2545_s19, 5  ;;  %493 = vst.msk [vmem:[#allocation2] sm:$0xff] (!%p1977_p4), %vm492_vm0, %v490_v0  ;;  %494 = vst.msk [vmem:[#allocation2 + $0x8] sm:$0xff] (!%p1977_p4), %vm492_vm0, %v491_v1 }
  0x39   : > { %s2560_s26 = scalar_lea.vmem %s2860_s4, %s2017_s17  ;;  %s2565_s29 = scalar_lea.vmem %s2861_s5, %s2020_s18 }
  0x3a   : > { %s458_s21 = scalar_lea.vmem %s2879_s2, %s2017_s17  ;;  %s476_s14 = scalar_lea.vmem %s2862_s6, %s2545_s19 }
  0x3b   : > { %s2555_s15 = scalar_lea.vmem %s2880_s3, %s2017_s17  ;;  %s479_s22 = scalar_lea.vmem %s2863_s7, %s2545_s19 }
  0x3c   : > { %s1976_s23 = sshll.u32 %s2545_s19, 3 }
  0x3d   : > { %s2579_s24 = scalar_lea.vmem %s2864_s8, %s1976_s23 }
  0x3e PF: > { %v2275_v2 = vld [vmem:[%s458_s21] sm:$0xff]   ;;  %v2414_v3 = vmov 0.0   ;;  %v2276_v4 = vld [vmem:[%s458_s21 + $0x8] sm:$0xff]   ;;  %vm2415_vm1 = vmmov 0   ;;  %vm522_vm2 = vcmask 261120   ;;  %s2416_s0 = smov 96  }
  0x3f   : > { %2067 = vmatprep.subr.bf16.mxu0 %v2414_v3  ;;  %2075 = vmatprep.subr.bf16.mxu1 %v2414_v3  ;;  %v2586_v5 = vld [vmem:[#allocation2] sm:$0xff]  ;;  %v2588_v6 = vld [vmem:[#allocation2 + $0x8] sm:$0xff]  ;;  %vm590_vm3 = vcmask 64512   ;;  %s2417_s18 = smov 64   ;;  %s2418_s21 = smov 88   ;;  %vm715_vm4 = vcmask 1043456  }
  0x40   : > { %2068 = vmatpush3.bf16.msra.mxu0 %v2275_v2  ;;  %2071 = vmatprep.mubr.msk.bf16.mxu0 %vm2415_vm1, %v2414_v3  ;;  %v497_v7 = vpack.c.bf16 %v2588_v6, %v2586_v5  ;;  %v1978_v8 = vld [vmem:[%s476_s14] ss:$0 sm:$0xff]  ;;  %v2630_v30 = vld [vmem:[%s2857_s1 + $0x1] ss:$0 sm:$0xff]  ;;  %s2419_s25 = smov 120   ;;  %s2420_s27 = smov 56  }
  0x41   : > { %2069 = vmatprep.subr.bf16.mxu0 %v2414_v3  ;;  %2077 = vmatprep.mubr.msk.bf16.mxu1 %vm2415_vm1, %v2414_v3  ;;  %v2624_v25 = vld [vmem:[%s2857_s1] ss:$0 sm:$0xff]  ;;  %s2421_s28 = smov 80   ;;  %s2422_s16 = smov 112   ;;  %vm1495_vm5 = vcmask 130048   ;;  %vm1498_vm6 = vcmask 195584  }
  0x42   : > { %s2423_s14 = smov 48   ;;  %s2424_s20 = smov 72   ;;  %vm1714_vm7 = vcmask 523264  }
  0x43   : > { %s2425_s23 = smov 104   ;;  %s2427_s2 = smov 8  }
  0x44   : > { %2070 = vmatpush3.bf16.msra.mxu0 %v2276_v4  ;;  %s2428_s3 = smov 16   ;;  %s2429_s12 = smov 24  }
  0x45   : > { %2081 = vmatprep.subr.bf16.mxu0 %v2414_v3  ;;  %p2012_p6 = scmp.ne.s32.totalorder %s2401_s30, 1 }
  0x47   : > { %2072 = vmatmul.mubr.msk.bf16.vlgmr.msra.gmra.mrb[0].mxu0 %vm522_vm2, %v497_v7 }
  0x48   : > { %2083 = vmatprep.mubr.msk.bf16.mxu0 %vm2415_vm1, %v2414_v3 }
 0x11a   : > { %v560_v9 = vpop.f32.mrb[0].mxu0 }
 0x11b   : > { %v561_v10 = vadd.f32 %v1978_v8, %v560_v9  ;;  %v2073_v11 = vpop.f32.mrb[1].mxu0 }
 0x11c   : > { %v563_v12 = vpop.f32.mrb[2].mxu0 }
 0x11d   : > { %v2599_v13 = vpack.c.bf16 %v561_v10, %v561_v10  ;;  %v564_v14 = vadd.f32 %v1978_v8, %v563_v12  ;;  %v2074_v15 = vpop.f32.mrb[3].mxu0  ;;  %v567_v19 = vmul.f32 0.35355338, %v561_v10 }
 0x11f   : > { %588 = vrot.lane.b32.xlu0 %v2599_v13, %s2416_s0  ;;  %v2602_v16 = vpack.c.bf16 %v564_v14, %v564_v14  ;;  %v2608_v22 = vpack.c.bf16 %v567_v19, %v567_v19  ;;  %v568_v23 = vmul.f32 0.35355338, %v564_v14 }
 0x121   : > { %v2615_v24 = vpack.c.bf16 %v568_v23, %v568_v23 }
 0x123   : > { %638 = vrot.lane.b32.xlu0 %v2602_v16, %s2416_s0  ;;  %s2426_s0 = smov 40  }
 0x191   : > { %v589_v17 = vpop.permute.xlu0 %588 }
 0x192   : > { %v595_v18 = vsel %vm590_vm3, %v589_v17, 0 }
 0x193   : > { %2076 = vmatpush3.bf16.xpose.msra.mxu1 %v595_v18 }
 0x194   : > { %2087 = vmatprep.subr.bf16.mxu1 %v2414_v3 }
 0x195   : > { %v639_v20 = vpop.permute.xlu0 %638 }
 0x196   : > { %v644_v21 = vsel %vm590_vm3, %v639_v20, 0 }
 0x197   : > { %2082 = vmatpush3.bf16.xpose.msra.mxu0 %v644_v21 }
 0x198   : > { %2093 = vmatprep.subr.bf16.mxu0 %v2414_v3 }
 0x19a   : > { %2078 = vmatmul.mubr.msk.bf16.vlgmr.msra.gmra.mrb[0].mxu1 %vm590_vm3, %v2608_v22 }
 0x19b   : > { %2089 = vmatprep.mubr.msk.bf16.mxu1 %vm2415_vm1, %v2414_v3 }
 0x19e   : > { %2084 = vmatmul.mubr.msk.bf16.vlgmr.msra.gmra.mrb[4].mxu0 %vm590_vm3, %v2615_v24 }
 0x19f   : > { %2095 = vmatprep.mubr.msk.bf16.mxu0 %vm2415_vm1, %v2414_v3 }
 0x26d   : > { %v631_v26 = vpop.f32.mrb[0].mxu1 }
 0x26e   : > { %v632_v27 = vadd.f32 %v2624_v25, %v631_v26  ;;  %v2079_v28 = vpop.f32.mrb[1].mxu1 }
 0x26f   : > { %v634_v29 = vpop.f32.mrb[2].mxu1 }
 0x270   : > { %v2080_v31 = vpop.f32.mrb[3].mxu1  ;;  %v686_v32 = vsel %vm590_vm3, %v632_v27, -inf }
 0x271   : > { %687 = vmax.xlane.f32.xlu1 %v686_v32  ;;  %v680_v33 = vpop.f32.mrb[4].mxu0 }
 0x272   : > { %v681_v34 = vadd.f32 %v2630_v30, %v680_v33  ;;  %v2085_v35 = vpop.f32.mrb[5].mxu0 }
 0x273   : > { %v683_v36 = vpop.f32.mrb[6].mxu0 }
 0x274   : > { %v2086_v37 = vpop.f32.mrb[7].mxu0  ;;  %v689_v38 = vsel %vm590_vm3, %v681_v34, -inf }
 0x275   : > { %690 = vmax.xlane.f32.xlu1 %v689_v38 }
 0x286   : > { %710 = vrot.lane.b32.xlu1 %v2599_v13, %s2417_s18 }
 0x28a   : > { %759 = vrot.lane.b32.xlu1 %v2602_v16, %s2417_s18 }
 0x28e   : > { %810 = vrot.lane.b32.xlu1 %v2599_v13, %s2418_s21 }
 0x2fe   : > { %v688_v39 = vpop.xlane.xlu1 %687 }
 0x2ff   : > { %v692_v40 = vsub.f32 %v632_v27, %v688_v39 }
 0x301   : > { %v694_v41 = vmul.f32 1.442695, %v692_v40 }
 0x302   : > { %v691_v42 = vpop.xlane.xlu1 %690 }
 0x303   : > { %2285 = vpow2.f32 %v694_v41  ;;  %v693_v43 = vsub.f32 %v681_v34, %v691_v42 }
 0x305   : > { %v696_v44 = vmul.f32 1.442695, %v693_v43 }
 0x306   : > { %v711_v45 = vpop.permute.xlu1 %710 }
 0x307   : > { %2287 = vpow2.f32 %v696_v44  ;;  %v717_v46 = vsel %vm715_vm4, %v711_v45, 0 }
 0x308   : > { %2088 = vmatpush3.bf16.msra.mxu1 %v717_v46 }
 0x309   : > { %2099 = vmatprep.subr.bf16.mxu1 %v2414_v3 }
 0x30a   : > { %v760_v47 = vpop.permute.xlu1 %759 }
 0x30b   : > { %v765_v48 = vsel %vm715_vm4, %v760_v47, 0 }
 0x30c   : > { %2094 = vmatpush3.bf16.msra.mxu0 %v765_v48 }
 0x30d   : > { %v2286_v49 = vpop.eup %2285  ;;  %2105 = vmatprep.subr.bf16.mxu0 %v2414_v3 }
 0x30e   : > { %v698_v50 = vsel %vm590_vm3, %v2286_v49, 0.0  ;;  %v811_v53 = vpop.permute.xlu1 %810 }
 0x30f   : > { %699 = vadd.xlane.f32.xlu0 %v698_v50  ;;  %v816_v60 = vsel %vm590_vm3, %v811_v53, 0 }
 0x311   : > { %v2288_v51 = vpop.eup %2287 }
 0x312   : > { %v701_v52 = vsel %vm590_vm3, %v2288_v51, 0.0 }
 0x313   : > { %702 = vadd.xlane.f32.xlu1 %v701_v52 }
 0x324   : > { %861 = vrot.lane.b32.xlu1 %v2602_v16, %s2418_s21 }
 0x325   : > { %808 = vrot.lane.b32.xlu0 %v2608_v22, %s2419_s25 }
 0x328   : > { %859 = vrot.lane.b32.xlu1 %v2615_v24, %s2419_s25 }
 0x39c   : > { %v700_v54 = vpop.xlane.xlu0 %699 }
 0x39d   : > { %2289 = vrcp.f32 %v700_v54 }
 0x3a0   : > { %v703_v55 = vpop.xlane.xlu1 %702  ;;  %v809_v1 = vpop.permute.xlu0 %808 }
 0x3a1   : > { %2291 = vrcp.f32 %v703_v55 }
 0x3a4   : > { %v862_v62 = vpop.permute.xlu1 %861 }
 0x3a5   : > { %v867_v0 = vsel %vm590_vm3, %v862_v62, 0 }
 0x3a7   : > { %v2290_v56 = vpop.eup %2289 }
 0x3a8   : > { %v706_v57 = vmul.f32 %v2290_v56, %v2286_v49  ;;  %v860_v2 = vpop.permute.xlu1 %859 }
 0x3aa   : > { %v708_v58 = vpack.c.bf16 %v706_v57, %v706_v57 }
 0x3ab   : > { %v2292_v59 = vpop.eup %2291 }
 0x3ac   : > { %v707_v61 = vmul.f32 %v2292_v59, %v2288_v51  ;;  %2090 = vmatmul.mubr.msk.bf16.vlgmr.msra.gmra.mrb[4].mxu1 %vm590_vm3, %v708_v58 }
 0x3ad   : > { %2100 = vmatpush3.bf16.xpose.msra.mxu1 %v816_v60  ;;  %2101 = vmatprep.mubr.msk.bf16.mxu1 %vm2415_vm1, %v2414_v3 }
 0x3ae   : > { %v709_v63 = vpack.c.bf16 %v707_v61, %v707_v61  ;;  %2111 = vmatprep.subr.bf16.mxu1 %v2414_v3 }
 0x3b0   : > { %2096 = vmatmul.mubr.msk.bf16.vlgmr.msra.gmra.mrb[8].mxu0 %vm590_vm3, %v709_v63 }
 0x3b1   : > { %2106 = vmatpush3.bf16.xpose.msra.mxu0 %v867_v0  ;;  %2107 = vmatprep.mubr.msk.bf16.mxu0 %vm2415_vm1, %v2414_v3 }
 0x3b2   : > { %2117 = vmatprep.subr.bf16.mxu0 %v2414_v3 }
 0x3b4   : > { %2102 = vmatmul.mubr.msk.bf16.vlgmr.msra.gmra.mrb[8].mxu1 %vm590_vm3, %v809_v1 }
 0x3b5   : > { %2113 = vmatprep.mubr.msk.bf16.mxu1 %vm2415_vm1, %v2414_v3 }
 0x3b8   : > { %2108 = vmatmul.mubr.msk.bf16.vlgmr.msra.gmra.mrb[12].mxu0 %vm590_vm3, %v860_v2 }
 0x3b9   : > { %2119 = vmatprep.mubr.msk.bf16.mxu0 %vm2415_vm1, %v2414_v3 }
 0x47f   : > { %v2663_v4 = vpop.f32.mrb[4].mxu1 }
 0x480   : > { %v2091_v7 = vpop.f32.mrb[5].mxu1 }
 0x481   : > { %v756_v8 = vpop.f32.mrb[6].mxu1 }
 0x482   : > { %v2092_v9 = vpop.f32.mrb[7].mxu1 }
 0x483   : > { %v2665_v10 = vpop.f32.mrb[8].mxu0 }
 0x484   : > { %v2097_v11 = vpop.f32.mrb[9].mxu0 }
 0x485   : > { %v804_v12 = vpop.f32.mrb[10].mxu0 }
 0x486   : > { %v2098_v14 = vpop.f32.mrb[11].mxu0 }
 0x487   : > { %v852_v15 = vpop.f32.mrb[8].mxu1 }
 0x488   : > { %v853_v17 = vadd.f32 %v2624_v25, %v852_v15  ;;  %v2103_v18 = vpop.f32.mrb[9].mxu1 }
 0x489   : > { %v855_v19 = vpop.f32.mrb[10].mxu1 }
 0x48a   : > { %v2104_v20 = vpop.f32.mrb[11].mxu1  ;;  %v909_v21 = vsel %vm590_vm3, %v853_v17, -inf }
 0x48b   : > { %910 = vmax.xlane.f32.xlu1 %v909_v21  ;;  %v903_v23 = vpop.f32.mrb[12].mxu0 }
 0x48c   : > { %v904_v26 = vadd.f32 %v2630_v30, %v903_v23  ;;  %v2109_v27 = vpop.f32.mrb[13].mxu0 }
 0x48d   : > { %v906_v28 = vpop.f32.mrb[14].mxu0 }
 0x48e   : > { %v2110_v29 = vpop.f32.mrb[15].mxu0  ;;  %v912_v31 = vsel %vm590_vm3, %v904_v26, -inf }
 0x48f   : > { %913 = vmax.xlane.f32.xlu0 %v912_v31 }
 0x49c   : > { %933 = vrot.lane.b32.xlu1 %v2599_v13, %s2420_s27 }
 0x4a0   : > { %1031 = vrot.lane.b32.xlu1 %v2599_v13, %s2421_s28 }
 0x4a5   : > { %981 = vrot.lane.b32.xlu0 %v2602_v16, %s2420_s27 }
 0x4a9   : > { %1029 = vrot.lane.b32.xlu0 %v2608_v22, %s2422_s16 }
 0x518   : > { %v911_v32 = vpop.xlane.xlu1 %910 }
 0x519   : > { %v915_v33 = vsub.f32 %v853_v17, %v911_v32 }
 0x51b   : > { %v917_v34 = vmul.f32 1.442695, %v915_v33 }
 0x51c   : > { %v934_v35 = vpop.permute.xlu1 %933  ;;  %v914_v36 = vpop.xlane.xlu0 %913 }
 0x51d   : > { %2293 = vpow2.f32 %v917_v34  ;;  %v939_v37 = vsel %vm715_vm4, %v934_v35, 0  ;;  %v916_v38 = vsub.f32 %v904_v26, %v914_v36 }
 0x51e   : > { %2112 = vmatpush3.bf16.msra.mxu1 %v939_v37 }
 0x51f   : > { %v919_v39 = vmul.f32 1.442695, %v916_v38  ;;  %2123 = vmatprep.subr.bf16.mxu1 %v2414_v3 }
 0x520   : > { %v982_v40 = vpop.permute.xlu0 %981  ;;  %v1032_v46 = vpop.permute.xlu1 %1031 }
 0x521   : > { %2295 = vpow2.f32 %v919_v39  ;;  %v987_v41 = vsel %vm715_vm4, %v982_v40, 0  ;;  %v1037_v53 = vsel %vm590_vm3, %v1032_v46, 0 }
 0x522   : > { %2118 = vmatpush3.bf16.msra.mxu0 %v987_v41 }
 0x523   : > { %2129 = vmatprep.subr.bf16.mxu0 %v2414_v3 }
 0x524   : > { %v1030_v58 = vpop.permute.xlu0 %1029 }
 0x527   : > { %v2294_v42 = vpop.eup %2293 }
 0x528   : > { %v921_v43 = vsel %vm590_vm3, %v2294_v42, 0.0 }
 0x529   : > { %922 = vadd.xlane.f32.xlu1 %v921_v43 }
 0x52b   : > { %v2296_v44 = vpop.eup %2295 }
 0x52c   : > { %v924_v45 = vsel %vm590_vm3, %v2296_v44, 0.0 }
 0x52d   : > { %925 = vadd.xlane.f32.xlu1 %v924_v45 }
 0x53e   : > { %1081 = vrot.lane.b32.xlu1 %v2602_v16, %s2421_s28 }
 0x542   : > { %1079 = vrot.lane.b32.xlu1 %v2615_v24, %s2422_s16 }
 0x5b6   : > { %v923_v47 = vpop.xlane.xlu1 %922 }
 0x5b7   : > { %2297 = vrcp.f32 %v923_v47 }
 0x5ba   : > { %v926_v48 = vpop.xlane.xlu1 %925 }
 0x5bb   : > { %2299 = vrcp.f32 %v926_v48 }
 0x5be   : > { %v1082_v55 = vpop.permute.xlu1 %1081 }
 0x5bf   : > { %v1087_v57 = vsel %vm590_vm3, %v1082_v55, 0 }
 0x5c1   : > { %v2298_v49 = vpop.eup %2297 }
 0x5c2   : > { %v929_v50 = vmul.f32 %v2298_v49, %v2294_v42  ;;  %v1080_v59 = vpop.permute.xlu1 %1079 }
 0x5c4   : > { %v931_v51 = vpack.c.bf16 %v929_v50, %v929_v50 }
 0x5c5   : > { %v2300_v52 = vpop.eup %2299 }
 0x5c6   : > { %v930_v54 = vmul.f32 %v2300_v52, %v2296_v44  ;;  %2114 = vmatmul.mubr.msk.bf16.vlgmr.msra.gmra.mrb[12].mxu1 %vm590_vm3, %v931_v51 }
 0x5c7   : > { %2124 = vmatpush3.bf16.xpose.msra.mxu1 %v1037_v53  ;;  %2125 = vmatprep.mubr.msk.bf16.mxu1 %vm2415_vm1, %v2414_v3 }
 0x5c8   : > { %v932_v56 = vpack.c.bf16 %v930_v54, %v930_v54  ;;  %2135 = vmatprep.subr.bf16.mxu1 %v2414_v3 }
 0x5ca   : > { %2120 = vmatmul.mubr.msk.bf16.vlgmr.msra.gmra.mrb[16].mxu0 %vm590_vm3, %v932_v56 }
 0x5cb   : > { %2130 = vmatpush3.bf16.xpose.msra.mxu0 %v1087_v57  ;;  %2131 = vmatprep.mubr.msk.bf16.mxu0 %vm2415_vm1, %v2414_v3 }
 0x5cc   : > { %2141 = vmatprep.subr.bf16.mxu0 %v2414_v3 }
 0x5ce   : > { %2126 = vmatmul.mubr.msk.bf16.vlgmr.msra.gmra.mrb[16].mxu1 %vm590_vm3, %v1030_v58 }
 0x5cf   : > { %2137 = vmatprep.mubr.msk.bf16.mxu1 %vm2415_vm1, %v2414_v3 }
 0x5d2   : > { %2132 = vmatmul.mubr.msk.bf16.vlgmr.msra.gmra.mrb[20].mxu0 %vm590_vm3, %v1080_v59 }
 0x5d3   : > { %2143 = vmatprep.mubr.msk.bf16.mxu0 %vm2415_vm1, %v2414_v3 }
 0x699   : > { %v2699_v60 = vpop.f32.mrb[12].mxu1 }
 0x69a   : > { %v2115_v61 = vpop.f32.mrb[13].mxu1 }
 0x69b   : > { %v978_v62 = vpop.f32.mrb[14].mxu1 }
 0x69c   : > { %v2116_v63 = vpop.f32.mrb[15].mxu1 }
 0x69d   : > { %v2701_v0 = vpop.f32.mrb[16].mxu0 }
 0x69e   : > { %v2260_v1 = vpack.i.bf16 %v2701_v0, %v2699_v60  ;;  %v2121_v2 = vpop.f32.mrb[17].mxu0 }
 0x69f   : > { %v1026_v7 = vpop.f32.mrb[18].mxu0 }
 0x6a0   : > { %v2122_v8 = vpop.f32.mrb[19].mxu0 }
 0x6a1   : > { %v1073_v9 = vpop.f32.mrb[16].mxu1 }
 0x6a2   : > { %v1074_v11 = vadd.f32 %v2624_v25, %v1073_v9  ;;  %v2127_v12 = vpop.f32.mrb[17].mxu1 }
 0x6a3   : > { %v1076_v14 = vpop.f32.mrb[18].mxu1 }
 0x6a4   : > { %v2128_v15 = vpop.f32.mrb[19].mxu1  ;;  %v1129_v17 = vsel %vm590_vm3, %v1074_v11, -inf }
 0x6a5   : > { %1130 = vmax.xlane.f32.xlu0 %v1129_v17  ;;  %v1123_v18 = vpop.f32.mrb[20].mxu0 }
 0x6a6   : > { %v1124_v19 = vadd.f32 %v2630_v30, %v1123_v18  ;;  %v2133_v20 = vpop.f32.mrb[21].mxu0 }
 0x6a7   : > { %v1126_v21 = vpop.f32.mrb[22].mxu0 }
 0x6a8   : > { %v2134_v23 = vpop.f32.mrb[23].mxu0  ;;  %v1132_v26 = vsel %vm590_vm3, %v1124_v19, -inf }
 0x6a9   : > { %1133 = vmax.xlane.f32.xlu1 %v1132_v26 }
 0x6ba   : > { %1153 = vrot.lane.b32.xlu1 %v2599_v13, %s2423_s14 }
 0x6be   : > { %1251 = vrot.lane.b32.xlu1 %v2599_v13, %s2424_s20 }
 0x6c2   : > { %1301 = vrot.lane.b32.xlu1 %v2602_v16, %s2424_s20 }
 0x6c6   : > { %1299 = vrot.lane.b32.xlu1 %v2615_v24, %s2425_s23 }
 0x732   : > { %v1131_v27 = vpop.xlane.xlu0 %1130 }
 0x733   : > { %v1135_v28 = vsub.f32 %v1074_v11, %v1131_v27 }
 0x735   : > { %v1137_v29 = vmul.f32 1.442695, %v1135_v28 }
 0x736   : > { %v1134_v31 = vpop.xlane.xlu1 %1133 }
 0x737   : > { %2301 = vpow2.f32 %v1137_v29  ;;  %v1136_v32 = vsub.f32 %v1124_v19, %v1134_v31 }
 0x739   : > { %v1139_v33 = vmul.f32 1.442695, %v1136_v32 }
 0x73a   : > { %v1154_v34 = vpop.permute.xlu1 %1153 }
 0x73b   : > { %2303 = vpow2.f32 %v1139_v33  ;;  %v1159_v35 = vsel %vm715_vm4, %v1154_v34, 0 }
 0x73c   : > { %2136 = vmatpush3.bf16.msra.mxu1 %v1159_v35 }
 0x73d   : > { %2147 = vmatprep.subr.bf16.mxu1 %v2414_v3 }
 0x73e   : > { %v1252_v44 = vpop.permute.xlu1 %1251 }
 0x73f   : > { %v1257_v48 = vsel %vm590_vm3, %v1252_v44, 0 }
 0x741   : > { %v2302_v36 = vpop.eup %2301 }
 0x742   : > { %v1141_v37 = vsel %vm590_vm3, %v2302_v36, 0.0 }
 0x743   : > { %1142 = vadd.xlane.f32.xlu0 %v1141_v37 }
 0x745   : > { %v2304_v38 = vpop.eup %2303 }
 0x746   : > { %v1144_v24 = vsel %vm590_vm3, %v2304_v38, 0.0 }
 0x747   : > { %1145 = vadd.xlane.f32.xlu0 %v1144_v24 }
 0x75d   : > { %1201 = vrot.lane.b32.xlu0 %v2602_v16, %s2423_s14 }
 0x761   : > { %1249 = vrot.lane.b32.xlu0 %v2608_v22, %s2425_s23  ;;  %v1302_v22 = vpop.permute.xlu1 %1301 }
 0x762   : > { %v1307_v51 = vsel %vm590_vm3, %v1302_v22, 0 }
 0x765   : > { %v1300_v53 = vpop.permute.xlu1 %1299 }
 0x7d0   : > { %v1143_v39 = vpop.xlane.xlu0 %1142 }
 0x7d1   : > { %2305 = vrcp.f32 %v1143_v39  ;;  %v2277_v39 = vld [vmem:[%s2555_s15] sm:$0xff]  }
 0x7d4   : > { %v1146_v40 = vpop.xlane.xlu0 %1145 }
 0x7d5   : > { %2307 = vrcp.f32 %v1146_v40  ;;  %v2278_v40 = vld [vmem:[%s2555_s15 + $0x8] sm:$0xff]  }
 0x7d8   : > { %v1202_v41 = vpop.permute.xlu0 %1201 }
 0x7d9   : > { %v1207_v42 = vsel %vm715_vm4, %v1202_v41, 0 }
 0x7da   : > { %2142 = vmatpush3.bf16.msra.mxu0 %v1207_v42 }
 0x7db   : > { %v2306_v43 = vpop.eup %2305  ;;  %2153 = vmatprep.subr.bf16.mxu0 %v2414_v3 }
 0x7dc   : > { %v1149_v45 = vmul.f32 %v2306_v43, %v2302_v36  ;;  %v1250_v52 = vpop.permute.xlu0 %1249 }
 0x7de   : > { %v1151_v46 = vpack.c.bf16 %v1149_v45, %v1149_v45 }
 0x7df   : > { %v2308_v47 = vpop.eup %2307 }
 0x7e0   : > { %v1150_v49 = vmul.f32 %v2308_v47, %v2304_v38  ;;  %2138 = vmatmul.mubr.msk.bf16.vlgmr.msra.gmra.mrb[20].mxu1 %vm590_vm3, %v1151_v46 }
 0x7e1   : > { %2148 = vmatpush3.bf16.xpose.msra.mxu1 %v1257_v48  ;;  %2149 = vmatprep.mubr.msk.bf16.mxu1 %vm2415_vm1, %v2414_v3 }
 0x7e2   : > { %v1152_v50 = vpack.c.bf16 %v1150_v49, %v1150_v49  ;;  %2159 = vmatprep.subr.bf16.mxu1 %v2414_v3 }
 0x7e4   : > { %2144 = vmatmul.mubr.msk.bf16.vlgmr.msra.gmra.mrb[24].mxu0 %vm590_vm3, %v1152_v50 }
 0x7e5   : > { %2154 = vmatpush3.bf16.xpose.msra.mxu0 %v1307_v51  ;;  %2155 = vmatprep.mubr.msk.bf16.mxu0 %vm2415_vm1, %v2414_v3 }
 0x7e6   : > { %2165 = vmatprep.subr.bf16.mxu0 %v2414_v3 }
 0x7e8   : > { %2150 = vmatmul.mubr.msk.bf16.vlgmr.msra.gmra.mrb[24].mxu1 %vm590_vm3, %v1250_v52 }
 0x7e9   : > { %2161 = vmatprep.mubr.msk.bf16.mxu1 %vm2415_vm1, %v2414_v3 }
 0x7ec   : > { %2156 = vmatmul.mubr.msk.bf16.vlgmr.msra.gmra.mrb[28].mxu0 %vm590_vm3, %v1300_v53 }
 0x7ed   : > { %2167 = vmatprep.mubr.msk.bf16.mxu0 %vm2415_vm1, %v2414_v3 }
 0x8b3   : > { %v1195_v54 = vpop.f32.mrb[20].mxu1 }
 0x8b4   : > { %v2139_v55 = vpop.f32.mrb[21].mxu1 }
 0x8b5   : > { %v1198_v56 = vpop.f32.mrb[22].mxu1 }
 0x8b6   : > { %v2140_v57 = vpop.f32.mrb[23].mxu1 }
 0x8b7   : > { %v1243_v58 = vpop.f32.mrb[24].mxu0 }
 0x8b8   : > { %v2265_v59 = vpack.i.bf16 %v1243_v58, %v1195_v54  ;;  %v2145_v61 = vpop.f32.mrb[25].mxu0 }
 0x8b9   : > { %v1246_v62 = vpop.f32.mrb[26].mxu0 }
 0x8ba   : > { %v2146_v63 = vpop.f32.mrb[27].mxu0 }
 0x8bb   : > { %v1293_v2 = vpop.f32.mrb[24].mxu1 }
 0x8bc   : > { %v1294_v7 = vadd.f32 %v2624_v25, %v1293_v2  ;;  %v2151_v8 = vpop.f32.mrb[25].mxu1 }
 0x8bd   : > { %v1296_v9 = vpop.f32.mrb[26].mxu1  ;;  %v1506_v8 = vlaneseq }
 0x8be   : > { %v2152_v11 = vpop.f32.mrb[27].mxu1  ;;  %v1349_v12 = vsel %vm590_vm3, %v1294_v7, -inf }
 0x8bf   : > { %1350 = vmax.xlane.f32.xlu0 %v1349_v12  ;;  %v1343_v14 = vpop.f32.mrb[28].mxu0  ;;  %v2770_v9 = vshrl.u32 %v1506_v8, 7  ;;  %v2774_v11 = vld [vmem:[%s2579_s24] sm:$0x3f] }
 0x8c0   : > { %v1344_v15 = vadd.f32 %v2630_v30, %v1343_v14  ;;  %v2157_v17 = vpop.f32.mrb[29].mxu0 }
 0x8c1   : > { %v1346_v18 = vpop.f32.mrb[30].mxu0 }
 0x8c2   : > { %v2158_v19 = vpop.f32.mrb[31].mxu0  ;;  %v1352_v20 = vsel %vm590_vm3, %v1344_v15, -inf }
 0x8c3   : > { %1353 = vmax.xlane.f32.xlu1 %v1352_v20 }
 0x8d4   : > { %1373 = vrot.lane.b32.xlu1 %v2599_v13, %s2426_s0 }
 0x8d8   : > { %2261 = vrot.lane.b32.xlu1 %v2260_v1, %s2427_s2 }
 0x8dc   : > { %2266 = vrot.lane.b32.xlu1 %v2265_v59, %s2428_s3 }
 0x94c   : > { %v1351_v25 = vpop.xlane.xlu0 %1350 }
 0x94d   : > { %v1355_v21 = vsub.f32 %v1294_v7, %v1351_v25 }
 0x94f   : > { %v1357_v30 = vmul.f32 1.442695, %v1355_v21 }
 0x950   : > { %v1354_v23 = vpop.xlane.xlu1 %1353 }
 0x951   : > { %2309 = vpow2.f32 %v1357_v30  ;;  %v1356_v26 = vsub.f32 %v1344_v15, %v1354_v23 }
 0x953   : > { %v1359_v27 = vmul.f32 1.442695, %v1356_v26 }
 0x954   : > { %v1374_v28 = vpop.permute.xlu1 %1373 }
 0x955   : > { %2311 = vpow2.f32 %v1359_v27  ;;  %v1379_v29 = vsel %vm715_vm4, %v1374_v28, 0 }
 0x956   : > { %2160 = vmatpush3.bf16.msra.mxu1 %v1379_v29 }
 0x957   : > { %2171 = vmatprep.subr.bf16.mxu1 %v2414_v3 }
 0x958   : > { %v2262_v22 = vpop.permute.xlu1 %2261 }
 0x959   : > { %v2264_v51 = vunpack.i.h.bf16 %v2262_v22  ;;  %v2263_v52 = vunpack.i.l.bf16 %v2262_v22 }
 0x95b   : > { %v2310_v13 = vpop.eup %2309  ;;  %v1494_v56 = vsel %vm590_vm3, %v2665_v10, %v2264_v51  ;;  %v1493_v57 = vsel %vm590_vm3, %v2663_v4, %v2263_v52  ;;  %v1508_v10 = vsub.s32 0, %v2770_v9  ;;  %v2284_v51 = vld [vmem:[%s2565_s29 + $0x18] sm:$0xff]   ;;  %v2003_v52 = vld [vmem:[%s479_s22] ss:$0 sm:$0xff] }
 0x95c   : > { %v1361_v60 = vsel %vm590_vm3, %v2310_v13, 0.0  ;;  %v2267_v50 = vpop.permute.xlu1 %2266 }
 0x95d   : > { %1362 = vadd.xlane.f32.xlu0 %v1361_v60  ;;  %v2269_v53 = vunpack.i.h.bf16 %v2267_v50  ;;  %v2268_v54 = vunpack.i.l.bf16 %v2267_v50  ;;  %v1509_v4 = vrot.slane %v2774_v11, %v1508_v10  ;;  %v2283_v50 = vld [vmem:[%s2565_s29 + $0x10] sm:$0xff]  }
 0x95f   : > { %v2312_v0 = vpop.eup %2311  ;;  %v1496_v61 = vsel %vm1495_vm5, %v1493_v57, %v2268_v54  ;;  %v1497_v62 = vsel %vm1495_vm5, %v1494_v56, %v2269_v53 }
 0x960   : > { %v1364_v1 = vsel %vm590_vm3, %v2312_v0, 0.0 }
 0x961   : > { %1365 = vadd.xlane.f32.xlu0 %v1364_v1  ;;  %v2279_v1 = vld [vmem:[%s2560_s26] sm:$0xff]  }
 0x977   : > { %1421 = vrot.lane.b32.xlu0 %v2602_v16, %s2426_s0 }
 0x9ea   : > { %v1363_v31 = vpop.xlane.xlu0 %1362 }
 0x9eb   : > { %2313 = vrcp.f32 %v1363_v31  ;;  %v2280_v31 = vld [vmem:[%s2560_s26 + $0x8] sm:$0xff]  }
 0x9ee   : > { %v1366_v32 = vpop.xlane.xlu0 %1365 }
 0x9ef   : > { %2315 = vrcp.f32 %v1366_v32  ;;  %v2281_v32 = vld [vmem:[%s2565_s29] sm:$0xff]  }
 0x9f2   : > { %v1422_v33 = vpop.permute.xlu0 %1421 }
 0x9f3   : > { %v1427_v34 = vsel %vm715_vm4, %v1422_v33, 0  ;;  %v2282_v33 = vld [vmem:[%s2565_s29 + $0x8] sm:$0xff]  }
 0x9f4   : > { %2166 = vmatpush3.bf16.msra.mxu0 %v1427_v34 }
 0x9f5   : > { %v2314_v35 = vpop.eup %2313  ;;  %2179 = vmatprep.subr.bf16.mxu0 %v2414_v3 }
 0x9f6   : > { %v1369_v36 = vmul.f32 %v2314_v35, %v2310_v13 }
 0x9f8   : > { %v1371_v37 = vpack.c.bf16 %v1369_v36, %v1369_v36 }
 0x9f9   : > { %v2316_v38 = vpop.eup %2315 }
 0x9fa   : > { %v1370_v24 = vmul.f32 %v2316_v38, %v2312_v0  ;;  %2162 = vmatmul.mubr.msk.bf16.vlgmr.msra.gmra.mrb[28].mxu1 %vm590_vm3, %v1371_v37 }
 0x9fb   : > { %2175 = vmatprep.mubr.msk.bf16.mxu1 %vm2415_vm1, %v2414_v3  ;;  %2172 = vmatpush3.bf16.msra.mxu1 %v2277_v39 }
 0x9fc   : > { %v1372_v16 = vpack.c.bf16 %v1370_v24, %v1370_v24  ;;  %2173 = vmatprep.subr.bf16.mxu1 %v2414_v3 }
 0x9fe   : > { %2168 = vmatmul.mubr.msk.bf16.vlgmr.msra.gmra.mrb[32].mxu0 %vm590_vm3, %v1372_v16  ;;  %v1597_v16 = vsub.s32 1, %v2770_v9 }
 0x9ff   : > { %2183 = vmatprep.mubr.msk.bf16.mxu0 %vm2415_vm1, %v2414_v3  ;;  %2174 = vmatpush3.bf16.msra.mxu1 %v2278_v40  ;;  %v1603_v40 = vsub.s32 2, %v2770_v9 }
 0xa00   : > { %2187 = vmatprep.subr.bf16.mxu1 %v2414_v3  ;;  %2180 = vmatpush3.bf16.msra.mxu0 %v2279_v1  ;;  %v1598_v39 = vrot.slane %v2774_v11, %v1597_v16 }
 0xa01   : > { %2181 = vmatprep.subr.bf16.mxu0 %v2414_v3 }
 0xa04   : > { %2182 = vmatpush3.bf16.msra.mxu0 %v2280_v31  ;;  %v1789_v31 = vsub.s32 4, %v2770_v9 }
 0xacd   : > { %v1415_v41 = vpop.f32.mrb[28].mxu1 }
 0xace   : > { %v2163_v42 = vpop.f32.mrb[29].mxu1 }
 0xacf   : > { %v1418_v43 = vpop.f32.mrb[30].mxu1 }
 0xad0   : > { %v2164_v44 = vpop.f32.mrb[31].mxu1 }
 0xad1   : > { %v1463_v45 = vpop.f32.mrb[32].mxu0 }
 0xad2   : > { %v2270_v46 = vpack.i.bf16 %v1463_v45, %v1415_v41  ;;  %v2169_v47 = vpop.f32.mrb[33].mxu0 }
 0xad3   : > { %v1466_v48 = vpop.f32.mrb[34].mxu0 }
 0xad4   : > { %2271 = vrot.lane.b32.xlu0 %v2270_v46, %s2429_s12  ;;  %v2170_v49 = vpop.f32.mrb[35].mxu0  ;;  %v1604_v46 = vrot.slane %v2774_v11, %v1603_v40 }
 0xb46   : > { %v2272_v55 = vpop.permute.xlu0 %2271 }
 0xb47   : > { %v2274_v58 = vunpack.i.h.bf16 %v2272_v55  ;;  %v2273_v59 = vunpack.i.l.bf16 %v2272_v55 }
 0xb49   : > { %v1500_v63 = vsel %vm1498_vm6, %v1497_v62, %v2274_v58  ;;  %v1499_v2 = vsel %vm1498_vm6, %v1496_v61, %v2273_v59 }
 0xb4a   : > { %v1501_v7 = vpack.c.bf16 %v1500_v63, %v1499_v2 }
 0xb4c   : > { %2176 = vmatmul.mubr.msk.bf16.vlgmr.msra.gmra.mrb[32].mxu1 %vm522_vm2, %v1501_v7 }
 0xb4d   : > { %2195 = vmatprep.mubr.msk.bf16.mxu1 %vm2415_vm1, %v2414_v3  ;;  %2188 = vmatpush3.bf16.msra.mxu1 %v2281_v32  ;;  %v1795_v32 = vsub.s32 5, %v2770_v9 }
 0xb4e   : > { %2189 = vmatprep.subr.bf16.mxu1 %v2414_v3 }
 0xb51   : > { %2190 = vmatpush3.bf16.msra.mxu1 %v2282_v33  ;;  %v1790_v33 = vrot.slane %v2774_v11, %v1789_v31 }
 0xb52   : > { %2191 = vmatprep.subr.bf16.mxu1 %v2414_v3 }
 0xb55   : > { %2192 = vmatpush3.bf16.msra.mxu1 %v2283_v50 }
 0xb56   : > { %2193 = vmatprep.subr.bf16.mxu1 %v2414_v3  ;;  %v1688_v3 = vsub.s32 3, %v2770_v9 }
 0xb58   : > { %v1689_v63 = vrot.slane %v2774_v11, %v1688_v3 }
 0xb59   : > { %2194 = vmatpush3.bf16.msra.mxu1 %v2284_v51 }
 0xc1f   : > { %v1559_v12 = vpop.f32.mrb[32].mxu1 }
 0xc20   : > { %v1560_v14 = vadd.f32 %v1559_v12, %v1509_v4  ;;  %v2177_v15 = vpop.f32.mrb[33].mxu1 }
 0xc21   : > { %v1562_v17 = vpop.f32.mrb[34].mxu1 }
 0xc22   : > { %v1563_v18 = vadd.f32 %v1562_v17, %v1509_v4  ;;  %v2178_v19 = vpop.f32.mrb[35].mxu1  ;;  %v1566_v20 = vadd.f32 %v1560_v14, %v2586_v5 }
 0xc24   : > { %v1568_v25 = vsel %vm522_vm2, %v1566_v20, 0.0  ;;  %v1567_v21 = vadd.f32 %v1563_v18, %v2588_v6 }
 0xc25   : > { %1569 = vadd.xlane.f32.xlu1 %v1568_v25 }
 0xc26   : > { %v1571_v30 = vsel %vm522_vm2, %v1567_v21, 0.0 }
 0xc27   : > { %1572 = vadd.xlane.f32.xlu0 %v1571_v30 }
 0xcb2   : > { %v1570_v23 = vpop.xlane.xlu1 %1569 }
 0xcb3   : > { %v1575_v26 = vmul.f32 0.03125, %v1570_v23 }
 0xcb4   : > { %v1573_v27 = vpop.xlane.xlu0 %1572 }
 0xcb5   : > { %v1577_v28 = vsub.f32 %v1566_v20, %v1575_v26  ;;  %v1576_v29 = vmul.f32 0.03125, %v1573_v27 }
 0xcb7   : > { %v1578_v13 = vsub.f32 %v1567_v21, %v1576_v29  ;;  %v1579_v60 = vmul.f32 %v1577_v28, %v1577_v28 }
 0xcb9   : > { %v1581_v5 = vsel %vm522_vm2, %v1579_v60, 0.0  ;;  %v1580_v0 = vmul.f32 %v1578_v13, %v1578_v13 }
 0xcba   : > { %1582 = vadd.xlane.f32.xlu0 %v1581_v5 }
 0xcbb   : > { %v1584_v6 = vsel %vm522_vm2, %v1580_v0, 0.0 }
 0xcbc   : > { %1585 = vadd.xlane.f32.xlu1 %v1584_v6 }
 0xd47   : > { %v1583_v34 = vpop.xlane.xlu0 %1582 }
 0xd48   : > { %v1587_v35 = vmul.f32 0.03125, %v1583_v34 }
 0xd49   : > { %v1586_v36 = vpop.xlane.xlu1 %1585 }
 0xd4a   : > { %v1589_v37 = vadd.f32 1e-05, %v1587_v35  ;;  %v1588_v38 = vmul.f32 0.03125, %v1586_v36  ;;  %v1796_v35 = vrot.slane %v2774_v11, %v1795_v32 }
 0xd4c   : > { %2317 = vrsqrt.f32 %v1589_v37  ;;  %v1590_v24 = vadd.f32 1e-05, %v1588_v38 }
 0xd4e   : > { %2319 = vrsqrt.f32 %v1590_v24 }
 0xd56   : > { %v2318_v41 = vpop.eup %2317 }
 0xd57   : > { %v1593_v42 = vmul.f32 %v2318_v41, %v1577_v28 }
 0xd58   : > { %v2320_v43 = vpop.eup %2319 }
 0xd59   : > { %v1599_v44 = vmul.f32 %v1598_v39, %v1593_v42  ;;  %v1594_v45 = vmul.f32 %v2320_v43, %v1578_v13 }
 0xd5b   : > { %v1600_v47 = vmul.f32 %v1598_v39, %v1594_v45  ;;  %v1605_v48 = vadd.f32 %v1604_v46, %v1599_v44 }
 0xd5d   : > { %v1606_v49 = vadd.f32 %v1604_v46, %v1600_v47 }
 0xd5f   : > { %v1607_v22 = vpack.c.bf16 %v1606_v49, %v1605_v48 }
 0xd61   : > { %2184 = vmatmul.mubr.msk.bf16.vlgmr.msra.gmra.mrb[36].mxu0 %vm522_vm2, %v1607_v22 }
 0xe34   : > { %v1668_v53 = vpop.f32.mrb[36].mxu0 }
 0xe35   : > { %v1669_v54 = vadd.f32 %v2003_v52, %v1668_v53  ;;  %v2185_v55 = vpop.f32.mrb[37].mxu0 }
 0xe36   : > { %v1671_v56 = vpop.f32.mrb[38].mxu0 }
 0xe37   : > { %v1672_v57 = vadd.f32 %v2003_v52, %v1671_v56  ;;  %v2186_v58 = vpop.f32.mrb[39].mxu0  ;;  %v1675_v59 = vmax.f32 %v1669_v54, 0.0 }
 0xe39   : > { %v1676_v61 = vmax.f32 %v1672_v57, 0.0 }
 0xe3b   : > { %v1677_v62 = vpack.c.bf16 %v1676_v61, %v1675_v59 }
 0xe3d   : > { %2196 = vmatmul.mubr.msk.bf16.vlgmr.msra.gmra.mrb[36].mxu1 %vm1714_vm7, %v1677_v62 }
 0xf10   : > { %v1752_v2 = vpop.f32.mrb[36].mxu1 }
 0xf11   : > { %v1753_v7 = vadd.f32 %v1752_v2, %v1689_v63  ;;  %v2197_v8 = vpop.f32.mrb[37].mxu1 }
 0xf12   : > { %v1755_v10 = vpop.f32.mrb[38].mxu1 }
 0xf13   : > { %v1756_v4 = vadd.f32 %v1755_v10, %v1689_v63  ;;  %v2198_v12 = vpop.f32.mrb[39].mxu1  ;;  %v1759_v14 = vadd.f32 %v1753_v7, %v1605_v48 }
 0xf15   : > { %v1761_v15 = vsel %vm522_vm2, %v1759_v14, 0.0  ;;  %v1760_v17 = vadd.f32 %v1756_v4, %v1606_v49 }
 0xf16   : > { %1762 = vadd.xlane.f32.xlu0 %v1761_v15 }
 0xf17   : > { %v1764_v18 = vsel %vm522_vm2, %v1760_v17, 0.0 }
 0xf18   : > { %1765 = vadd.xlane.f32.xlu1 %v1764_v18 }
 0xfa3   : > { %v1763_v19 = vpop.xlane.xlu0 %1762 }
 0xfa4   : > { %v1767_v20 = vmul.f32 0.03125, %v1763_v19 }
 0xfa5   : > { %v1766_v25 = vpop.xlane.xlu1 %1765 }
 0xfa6   : > { %v1769_v21 = vsub.f32 %v1759_v14, %v1767_v20  ;;  %v1768_v30 = vmul.f32 0.03125, %v1766_v25 }
 0xfa8   : > { %v1770_v23 = vsub.f32 %v1760_v17, %v1768_v30  ;;  %v1771_v26 = vmul.f32 %v1769_v21, %v1769_v21 }
 0xfaa   : > { %v1773_v27 = vsel %vm522_vm2, %v1771_v26, 0.0  ;;  %v1772_v28 = vmul.f32 %v1770_v23, %v1770_v23 }
 0xfab   : > { %1774 = vadd.xlane.f32.xlu0 %v1773_v27 }
 0xfac   : > { %v1776_v29 = vsel %vm522_vm2, %v1772_v28, 0.0 }
 0xfad   : > { %1777 = vadd.xlane.f32.xlu1 %v1776_v29 }
0x1038   : > { %v1775_v13 = vpop.xlane.xlu0 %1774 }
0x1039   : > { %v1779_v60 = vmul.f32 0.03125, %v1775_v13 }
0x103a   : > { %v1778_v5 = vpop.xlane.xlu1 %1777 }
0x103b   : > { %v1781_v0 = vadd.f32 1e-05, %v1779_v60  ;;  %v1780_v6 = vmul.f32 0.03125, %v1778_v5 }
0x103d   : > { %2321 = vrsqrt.f32 %v1781_v0  ;;  %v1782_v1 = vadd.f32 1e-05, %v1780_v6 }
0x103f   : > { %2323 = vrsqrt.f32 %v1782_v1 }
0x1047   : > { %v2322_v34 = vpop.eup %2321 }
0x1048   : > { %v1785_v36 = vmul.f32 %v2322_v34, %v1769_v21 }
0x1049   : > { %v2324_v37 = vpop.eup %2323 }
0x104a   : > { %v1791_v38 = vmul.f32 %v1790_v33, %v1785_v36  ;;  %v1786_v24 = vmul.f32 %v2324_v37, %v1770_v23  ;;  %1804 = sbr.rel (%p2012_p6) target bundleno = 4177 (0x1051), region = 68 }
0x104c   : > { %v1797_v16 = vadd.f32 %v1796_v35, %v1791_v38  ;;  %v1792_v39 = vmul.f32 %v1790_v33, %v1786_v24 }
0x104e   : > { %1799 = vst.msk [vmem:[#allocation2] sm:$0xff] %vm522_vm2, %v1797_v16  ;;  %v1798_v40 = vadd.f32 %v1796_v35, %v1792_v39  ;;  %1805 = vst.msk [vmem:[#allocation6] sm:$0xff] (!%p2012_p6), %vm522_vm2, %v1797_v16 }
0x1050   : > { %1800 = vst.msk [vmem:[#allocation2 + $0x8] sm:$0xff] %vm522_vm2, %v1798_v40  ;;  %1806 = vst.msk [vmem:[#allocation6 + $0x8] sm:$0xff] (!%p2012_p6), %vm522_vm2, %v1798_v40 }
0x1051 PF: > { %s2881_s19 = sadd.s32 4294967295, %s2409_s11   ;;  %s2430_s22 = smov [#allocation6]  }
0x1052   : > { %p2820_p8 = scmp.eq.s32.totalorder %s2881_s19, 1  ;;  %s1816_s24 = sshll.u32 %s2430_s22, 4  ;;  %s1817_s24 = int_to_ptr.vmem [resolvable:$true] %s1816_s24 }
0x1053   : > { %s2353_s17 = scalar_lea.vmem %s1817_s24, 256  ;;  %p2360_p13 = scmp.lt.s32.totalorder %s1817_s24, %s1817_s24 }
0x1054   : > { %p2354_p10 = scmp.ne.s32.totalorder %s1817_s24, %s2353_s17  ;;  %p2361_p0 = scmp.lt.s32.totalorder %s2353_s17, %s2353_s17 }
0x1056   : > { %p2355_p11 = pnand %p2354_p10, %p2820_p8  ;;  %p2362_p1 = por %p2361_p0, %p2360_p13 }
0x1058   : > { %p2356_p12 = pneg %p2355_p11 }
0x105a   : > { %p2363_p2 = pnand %p2362_p1, %p2356_p12 }
0x105c   : > { %2366 = shalt.err (!%p2363_p2)
}
0x105d   : > { %s2367_s21 = scalar_lea.hbm %s2865_s9, 256 }
0x105e   : > { %p2368_p5 = scmp.ne.s32.totalorder %s2865_s9, %s2367_s21  ;;  %p2373_p3 = scmp.lt.u32.totalorder %s2367_s21, %s2865_s9 }
0x1060   : > { %p2369_p7 = pnand %p2368_p5, %p2820_p8 }
0x1062   : > { %p2370_p9 = pneg %p2369_p7 }
0x1064   : > { %p2375_p4 = pnand %p2373_p3, %p2370_p9 }
0x1066   : > { %2378 = shalt.err (!%p2375_p4)
}
0x1067   : > { %s2431_s14 = smov 128  }
0x1068   : > { %2204 = dma.vmem_to_hbm [thread:$0]  (%p2820_p8), %s1817_s24, 256, %s2865_s9, [#allocation5], %s2431_s14, %s2431_s14, %s2427_s2  }
0x1069   : > { %2396 = dma.done.wait (%p2820_p8), [#allocation5], 256  }
0x106a   : > { %2398 = vsyncadd (%p2820_p8), [#allocation5], 4294967040 }
0x106b PF: > { %s21_s11 = sadd.s32 1, %s2409_s11   ;;  %s2883_s30 = smov %s2405_s10 }
0x106c   : > { %p18_p6 = scmp.ge.s32.totalorder %s21_s11, 4   ;;  %s2884_s10 = smov %s2886_s13 }
0x106e   :  { %20 = sbr.rel (!%p18_p6) target bundleno = 7 (0x7), region = 119 }
0x1075   :  { %1832 = vsyncpa [#allocation4], 1 }
0x1076   :  { %1834 = vsyncpa [#allocation4 + $0x1], 1 }
0x1077   :  { %1835 = vsyncpa [#allocation5], 1 }
0x1078   :  { %1837 = vsyncpa [#allocation5 + $0x1], 1 }

</bundles_post_ra>
